<compile_context>
chip_gen: v7x
topology: tpu7x:2x2x1
jax: 0.10.0
libtpu: 0.0.40
codegen_flags: <defaults>
</compile_context>

<pallas_src>
import jax
import jax.numpy as jnp
from jax.experimental import pallas as pl
from jax.experimental.pallas import tpu as pltpu

EPS = 1e-5
NEG_SLOPE = 0.2
KH = 4          # conv kernel height
STRIDE_H = 2
PAD_H = 1


# ----------------------------- Pallas kernels ------------------------------ #

def conv_stats_kernel(x_ref, w_ref, o_ref, s_ref, q_ref):
    """Per-sample strided conv over H + fused per-channel sum / sum-of-squares.

    x_ref: (1, C_in, H, W)       raw input sample (no im2col, no pre-padding)
    w_ref: (KH, C_out, C_in)     per-tap weight matrices
    o_ref: (1, C_out, H_out, W)  conv output, written directly in NCHW order
    s_ref: (1, C_out, 1)         per-sample per-channel sum       (BN batch stats)
    q_ref: (1, C_out, 1)         per-sample per-channel sum of sq (BN batch stats)
    """
    c_out = o_ref.shape[1]
    h_out = o_ref.shape[2]
    w_len = o_ref.shape[3]
    h_in_total = x_ref.shape[2]

    # Hoist the (tiny) per-tap weight matrices out of the row loop.
    w_taps = [w_ref[k] for k in range(KH)]

    s = jnp.zeros((c_out, 1), jnp.float32)
    q = jnp.zeros((c_out, 1), jnp.float32)

    for ho in range(h_out):                      # static unroll over output rows
        acc = jnp.zeros((c_out, w_len), jnp.float32)
        for k in range(KH):
            h_in = STRIDE_H * ho + k - PAD_H     # input row for this tap
            if 0 <= h_in < h_in_total:           # static edge handling == zero pad
                acc = acc + jnp.dot(
                    w_taps[k], x_ref[0, :, h_in, :],
                    preferred_element_type=jnp.float32)
        o_ref[0, :, ho, :] = acc
        # Fused BN-stat accumulation (lane reduce -> XLU slot, essentially free).
        s = s + jnp.sum(acc, axis=-1, keepdims=True)
        q = q + jnp.sum(acc * acc, axis=-1, keepdims=True)

    s_ref[0] = s
    q_ref[0] = q


def bn_lrelu_kernel(x_ref, scale_ref, shift_ref, o_ref):
    """y = x * scale + shift (per channel, batch stats folded in), then LeakyReLU(0.2).

    x_ref/o_ref: (1, C_out, H_out, W); scale_ref/shift_ref: (1, C_out, 1, 1)
    """
    y = x_ref[...] * scale_ref[...] + shift_ref[...]
    o_ref[...] = jnp.where(y >= 0.0, y, NEG_SLOPE * y)


# ------------------------------ JAX wrapper -------------------------------- #

@jax.jit
def downsample_forward(x, w_conv, b_conv, gamma, beta):
    """Forward pass of DownSample. x: (B, C_in, H, W) NCHW, returns NCHW float32."""
    B, C_in, H, W = x.shape
    C_out = w_conv.shape[0]
    H_out = (H + 2 * PAD_H - KH) // STRIDE_H + 1

    x = x.astype(jnp.float32)
    # (C_out, C_in, KH, 1) -> (KH, C_out, C_in): one small tap-major weight tensor.
    w_taps = jnp.transpose(w_conv[:, :, :, 0], (2, 0, 1)).astype(jnp.float32)
    # b_conv is intentionally unused: a per-channel constant bias cancels exactly
    # in batch-statistics BatchNorm (mean/var are shift-invariant).
    del b_conv

    # ---- kernel 1: direct conv + fused per-channel sum / sumsq, gridded over B ----
    conv_out, s_part, q_part = pl.pallas_call(
        conv_stats_kernel,
        grid=(B,),
        in_specs=[
            pl.BlockSpec((1, C_in, H, W), lambda b: (b, 0, 0, 0)),
            pl.BlockSpec((KH, C_out, C_in), lambda b: (0, 0, 0)),
        ],
        out_specs=(
            pl.BlockSpec((1, C_out, H_out, W), lambda b: (b, 0, 0, 0)),
            pl.BlockSpec((1, C_out, 1), lambda b: (b, 0, 0)),
            pl.BlockSpec((1, C_out, 1), lambda b: (b, 0, 0)),
        ),
        out_shape=(
            jax.ShapeDtypeStruct((B, C_out, H_out, W), jnp.float32),
            jax.ShapeDtypeStruct((B, C_out, 1), jnp.float32),
            jax.ShapeDtypeStruct((B, C_out, 1), jnp.float32),
        ),
        compiler_params=pltpu.CompilerParams(dimension_semantics=("parallel",)),
    )(x, w_taps)

    # ---- tiny cross-batch reduction of the per-sample stats (C_out scalars) ----
    n = jnp.float32(B * H_out * W)
    s_tot = jnp.sum(s_part[:, :, 0], axis=0)                 # (C_out,)
    q_tot = jnp.sum(q_part[:, :, 0], axis=0)                 # (C_out,)
    mean = s_tot / n
    var = jnp.maximum(q_tot / n - mean * mean, 0.0)          # biased var (training BN)
    inv = jax.lax.rsqrt(var + EPS)
    g = gamma.astype(jnp.float32)
    scale = (g * inv).reshape(1, C_out, 1, 1)
    shift = (beta.astype(jnp.float32) - mean * g * inv).reshape(1, C_out, 1, 1)

    # ---- kernel 2: tiled BatchNorm-apply + LeakyReLU, gridded over B ----
    out = pl.pallas_call(
        bn_lrelu_kernel,
        grid=(B,),
        in_specs=[
            pl.BlockSpec((1, C_out, H_out, W), lambda b: (b, 0, 0, 0)),
            pl.BlockSpec((1, C_out, 1, 1), lambda b: (0, 0, 0, 0)),
            pl.BlockSpec((1, C_out, 1, 1), lambda b: (0, 0, 0, 0)),
        ],
        out_specs=pl.BlockSpec((1, C_out, H_out, W), lambda b: (b, 0, 0, 0)),
        out_shape=jax.ShapeDtypeStruct((B, C_out, H_out, W), jnp.float32),
        compiler_params=pltpu.CompilerParams(dimension_semantics=("parallel",)),
    )(conv_out, scale, shift)

    return out


# ------------------------------ reference ---------------------------------- #

def downsample_reference(x, w_conv, b_conv, gamma, beta):
    y = jax.lax.conv_general_dilated(
        x.astype(jnp.float32),
        w_conv.astype(jnp.float32),
        window_strides=(STRIDE_H, 1),
        padding=((PAD_H, PAD_H), (0, 0)),
        dimension_numbers=("NCHW", "OIHW", "NCHW"),
    ) + b_conv.reshape(1, -1, 1, 1)
    mean = jnp.mean(y, axis=(0, 2, 3), keepdims=True)
    var = jnp.mean((y - mean) ** 2, axis=(0, 2, 3), keepdims=True)
    yn = (y - mean) * jax.lax.rsqrt(var + EPS)
    yn = yn * gamma.reshape(1, -1, 1, 1) + beta.reshape(1, -1, 1, 1)
    return jnp.where(yn >= 0, yn, NEG_SLOPE * yn)


# --------------------------------- main ------------------------------------ #

if __name__ == "__main__":
    key = jax.random.PRNGKey(0)
    k_x, k_w, k_b = jax.random.split(key, 3)

    B, C_in, H, W = 2, 4, 16, 16
    C_out = 8

    x = jax.random.normal(k_x, (B, C_in, H, W), dtype=jnp.float32)

    # Deterministic parameter init (shapes per torch.nn.Conv2d / BatchNorm2d).
    fan_in = C_in * KH * 1
    w_conv = jax.random.uniform(
        k_w, (C_out, C_in, KH, 1), jnp.float32,
        minval=-1.0 / jnp.sqrt(fan_in), maxval=1.0 / jnp.sqrt(fan_in))
    b_conv = jax.random.uniform(
        k_b, (C_out,), jnp.float32,
        minval=-1.0 / jnp.sqrt(fan_in), maxval=1.0 / jnp.sqrt(fan_in))
    gamma = jnp.ones((C_out,), jnp.float32)   # BatchNorm2d default weight
    beta = jnp.zeros((C_out,), jnp.float32)   # BatchNorm2d default bias

    out = downsample_forward(x, w_conv, b_conv, gamma, beta)
    out = jax.block_until_ready(out)

    ref = downsample_reference(x, w_conv, b_conv, gamma, beta)
    assert out.shape == (B, C_out, H // 2, W), out.shape
    assert jnp.allclose(out, ref, rtol=1e-3, atol=1e-3), "mismatch vs reference"

    print("KERNEL_OK")
</pallas_src>

<mosaic_0001>
module attributes {stable_mosaic.version = 11 : i64} {
  func.func @conv_stats_kernel(%arg0: i32, %arg1: memref<1x4x16x16xf32, #tpu.memory_space<vmem>>, %arg2: memref<4x8x4xf32, #tpu.memory_space<vmem>>, %arg3: memref<1x8x8x16xf32, #tpu.memory_space<vmem>>, %arg4: memref<1x8x1xf32, #tpu.memory_space<vmem>>, %arg5: memref<1x8x1xf32, #tpu.memory_space<vmem>>) attributes {dimension_semantics = [#tpu.dimension_semantics<parallel>], iteration_bounds = array<i64: 2>, scalar_prefetch = 0 : i64, scratch_operands = 0 : i64, tpu.core_type = #tpu.core_type<tc>, window_params = [{transform_indices = @transform_0, window_bounds = array<i64: 1, 4, 16, 16>}, {pipeline_mode = #tpu.pipeline_mode<synchronous>, transform_indices = @transform_1, window_bounds = array<i64: 4, 8, 4>}, {transform_indices = @transform_2, window_bounds = array<i64: 1, 8, 8, 16>}, {transform_indices = @transform_3, window_bounds = array<i64: 1, 8, 1>}, {transform_indices = @transform_4, window_bounds = array<i64: 1, 8, 1>}]} {
    %c0 = arith.constant 0 : index
    %c0_0 = arith.constant 0 : index
    %c0_1 = arith.constant 0 : index
    %0 = vector.load %arg2[%c0, %c0_0, %c0_1] : memref<4x8x4xf32, #tpu.memory_space<vmem>>, vector<1x8x4xf32>
    %1 = vector.shape_cast %0 : vector<1x8x4xf32> to vector<8x4xf32>
    %c1 = arith.constant 1 : index
    %c0_2 = arith.constant 0 : index
    %c0_3 = arith.constant 0 : index
    %2 = vector.load %arg2[%c1, %c0_2, %c0_3] : memref<4x8x4xf32, #tpu.memory_space<vmem>>, vector<1x8x4xf32>
    %3 = vector.shape_cast %2 : vector<1x8x4xf32> to vector<8x4xf32>
    %c2 = arith.constant 2 : index
    %c0_4 = arith.constant 0 : index
    %c0_5 = arith.constant 0 : index
    %4 = vector.load %arg2[%c2, %c0_4, %c0_5] : memref<4x8x4xf32, #tpu.memory_space<vmem>>, vector<1x8x4xf32>
    %5 = vector.shape_cast %4 : vector<1x8x4xf32> to vector<8x4xf32>
    %c3 = arith.constant 3 : index
    %c0_6 = arith.constant 0 : index
    %c0_7 = arith.constant 0 : index
    %6 = vector.load %arg2[%c3, %c0_6, %c0_7] : memref<4x8x4xf32, #tpu.memory_space<vmem>>, vector<1x8x4xf32>
    %7 = vector.shape_cast %6 : vector<1x8x4xf32> to vector<8x4xf32>
    %cst = arith.constant 0.000000e+00 : f32
    %8 = vector.broadcast %cst : f32 to vector<8x1xf32>
    %cst_8 = arith.constant 0.000000e+00 : f32
    %9 = vector.broadcast %cst_8 : f32 to vector<8x1xf32>
    %cst_9 = arith.constant 0.000000e+00 : f32
    %10 = vector.broadcast %cst_9 : f32 to vector<8x16xf32>
    %c0_10 = arith.constant 0 : index
    %c0_11 = arith.constant 0 : index
    %c0_12 = arith.constant 0 : index
    %c0_13 = arith.constant 0 : index
    %11 = vector.load %arg1[%c0_10, %c0_11, %c0_12, %c0_13] : memref<1x4x16x16xf32, #tpu.memory_space<vmem>>, vector<1x4x1x16xf32>
    %12 = vector.shape_cast %11 : vector<1x4x1x16xf32> to vector<4x16xf32>
    %cst_14 = arith.constant dense<0.000000e+00> : vector<8x16xf32>
    %13 = tpu.matmul %3, %12, %cst_14 {dimension_numbers = #tpu.dot_dimension_numbers<[1], [0], [0], [1], [0, 0, 1, 1], [], []>} : vector<8x4xf32>, vector<4x16xf32>, vector<8x16xf32> -> vector<8x16xf32>
    %14 = arith.addf %10, %13 : vector<8x16xf32>
    %c0_15 = arith.constant 0 : index
    %c0_16 = arith.constant 0 : index
    %c1_17 = arith.constant 1 : index
    %c0_18 = arith.constant 0 : index
    %15 = vector.load %arg1[%c0_15, %c0_16, %c1_17, %c0_18] : memref<1x4x16x16xf32, #tpu.memory_space<vmem>>, vector<1x4x1x16xf32>
    %16 = vector.shape_cast %15 : vector<1x4x1x16xf32> to vector<4x16xf32>
    %cst_19 = arith.constant dense<0.000000e+00> : vector<8x16xf32>
    %17 = tpu.matmul %5, %16, %cst_19 {dimension_numbers = #tpu.dot_dimension_numbers<[1], [0], [0], [1], [0, 0, 1, 1], [], []>} : vector<8x4xf32>, vector<4x16xf32>, vector<8x16xf32> -> vector<8x16xf32>
    %18 = arith.addf %14, %17 : vector<8x16xf32>
    %c0_20 = arith.constant 0 : index
    %c0_21 = arith.constant 0 : index
    %c2_22 = arith.constant 2 : index
    %c0_23 = arith.constant 0 : index
    %19 = vector.load %arg1[%c0_20, %c0_21, %c2_22, %c0_23] : memref<1x4x16x16xf32, #tpu.memory_space<vmem>>, vector<1x4x1x16xf32>
    %20 = vector.shape_cast %19 : vector<1x4x1x16xf32> to vector<4x16xf32>
    %cst_24 = arith.constant dense<0.000000e+00> : vector<8x16xf32>
    %21 = tpu.matmul %7, %20, %cst_24 {dimension_numbers = #tpu.dot_dimension_numbers<[1], [0], [0], [1], [0, 0, 1, 1], [], []>} : vector<8x4xf32>, vector<4x16xf32>, vector<8x16xf32> -> vector<8x16xf32>
    %22 = arith.addf %18, %21 : vector<8x16xf32>
    %c0_25 = arith.constant 0 : index
    %c0_26 = arith.constant 0 : index
    %c0_27 = arith.constant 0 : index
    %c0_28 = arith.constant 0 : index
    %23 = vector.load %arg3[%c0_25, %c0_26, %c0_27, %c0_28] : memref<1x8x8x16xf32, #tpu.memory_space<vmem>>, vector<1x8x1x16xf32>
    %24 = vector.shape_cast %23 : vector<1x8x1x16xf32> to vector<8x16xf32>
    %25 = vector.shape_cast %22 : vector<8x16xf32> to vector<1x8x1x16xf32>
    tpu.vector_store %arg3[%c0_25, %c0_26, %c0_27, %c0_28], %25 {strides = array<i32>} : memref<1x8x8x16xf32, #tpu.memory_space<vmem>>, vector<1x8x1x16xf32>,
    %cst_29 = arith.constant dense<0.000000e+00> : vector<8xf32>
    %26 = vector.multi_reduction <add>, %22, %cst_29 [1] : vector<8x16xf32> to vector<8xf32>
    %27 = vector.shape_cast %26 : vector<8xf32> to vector<8x1xf32>
    %28 = arith.addf %8, %27 : vector<8x1xf32>
    %29 = arith.mulf %22, %22 : vector<8x16xf32>
    %cst_30 = arith.constant dense<0.000000e+00> : vector<8xf32>
    %30 = vector.multi_reduction <add>, %29, %cst_30 [1] : vector<8x16xf32> to vector<8xf32>
    %31 = vector.shape_cast %30 : vector<8xf32> to vector<8x1xf32>
    %32 = arith.addf %9, %31 : vector<8x1xf32>
    %cst_31 = arith.constant 0.000000e+00 : f32
    %33 = vector.broadcast %cst_31 : f32 to vector<8x16xf32>
    %c0_32 = arith.constant 0 : index
    %c0_33 = arith.constant 0 : index
    %c1_34 = arith.constant 1 : index
    %c0_35 = arith.constant 0 : index
    %34 = vector.load %arg1[%c0_32, %c0_33, %c1_34, %c0_35] : memref<1x4x16x16xf32, #tpu.memory_space<vmem>>, vector<1x4x1x16xf32>
    %35 = vector.shape_cast %34 : vector<1x4x1x16xf32> to vector<4x16xf32>
    %cst_36 = arith.constant dense<0.000000e+00> : vector<8x16xf32>
    %36 = tpu.matmul %1, %35, %cst_36 {dimension_numbers = #tpu.dot_dimension_numbers<[1], [0], [0], [1], [0, 0, 1, 1], [], []>} : vector<8x4xf32>, vector<4x16xf32>, vector<8x16xf32> -> vector<8x16xf32>
    %37 = arith.addf %33, %36 : vector<8x16xf32>
    %c0_37 = arith.constant 0 : index
    %c0_38 = arith.constant 0 : index
    %c2_39 = arith.constant 2 : index
    %c0_40 = arith.constant 0 : index
    %38 = vector.load %arg1[%c0_37, %c0_38, %c2_39, %c0_40] : memref<1x4x16x16xf32, #tpu.memory_space<vmem>>, vector<1x4x1x16xf32>
    %39 = vector.shape_cast %38 : vector<1x4x1x16xf32> to vector<4x16xf32>
    %cst_41 = arith.constant dense<0.000000e+00> : vector<8x16xf32>
    %40 = tpu.matmul %3, %39, %cst_41 {dimension_numbers = #tpu.dot_dimension_numbers<[1], [0], [0], [1], [0, 0, 1, 1], [], []>} : vector<8x4xf32>, vector<4x16xf32>, vector<8x16xf32> -> vector<8x16xf32>
    %41 = arith.addf %37, %40 : vector<8x16xf32>
    %c0_42 = arith.constant 0 : index
    %c0_43 = arith.constant 0 : index
    %c3_44 = arith.constant 3 : index
    %c0_45 = arith.constant 0 : index
    %42 = vector.load %arg1[%c0_42, %c0_43, %c3_44, %c0_45] : memref<1x4x16x16xf32, #tpu.memory_space<vmem>>, vector<1x4x1x16xf32>
    %43 = vector.shape_cast %42 : vector<1x4x1x16xf32> to vector<4x16xf32>
    %cst_46 = arith.constant dense<0.000000e+00> : vector<8x16xf32>
    %44 = tpu.matmul %5, %43, %cst_46 {dimension_numbers = #tpu.dot_dimension_numbers<[1], [0], [0], [1], [0, 0, 1, 1], [], []>} : vector<8x4xf32>, vector<4x16xf32>, vector<8x16xf32> -> vector<8x16xf32>
    %45 = arith.addf %41, %44 : vector<8x16xf32>
    %c0_47 = arith.constant 0 : index
    %c0_48 = arith.constant 0 : index
    %c4 = arith.constant 4 : index
    %c0_49 = arith.constant 0 : index
    %46 = vector.load %arg1[%c0_47, %c0_48, %c4, %c0_49] : memref<1x4x16x16xf32, #tpu.memory_space<vmem>>, vector<1x4x1x16xf32>
    %47 = vector.shape_cast %46 : vector<1x4x1x16xf32> to vector<4x16xf32>
    %cst_50 = arith.constant dense<0.000000e+00> : vector<8x16xf32>
    %48 = tpu.matmul %7, %47, %cst_50 {dimension_numbers = #tpu.dot_dimension_numbers<[1], [0], [0], [1], [0, 0, 1, 1], [], []>} : vector<8x4xf32>, vector<4x16xf32>, vector<8x16xf32> -> vector<8x16xf32>
    %49 = arith.addf %45, %48 : vector<8x16xf32>
    %c0_51 = arith.constant 0 : index
    %c0_52 = arith.constant 0 : index
    %c1_53 = arith.constant 1 : index
    %c0_54 = arith.constant 0 : index
    %50 = vector.load %arg3[%c0_51, %c0_52, %c1_53, %c0_54] : memref<1x8x8x16xf32, #tpu.memory_space<vmem>>, vector<1x8x1x16xf32>
    %51 = vector.shape_cast %50 : vector<1x8x1x16xf32> to vector<8x16xf32>
    %52 = vector.shape_cast %49 : vector<8x16xf32> to vector<1x8x1x16xf32>
    tpu.vector_store %arg3[%c0_51, %c0_52, %c1_53, %c0_54], %52 {strides = array<i32>} : memref<1x8x8x16xf32, #tpu.memory_space<vmem>>, vector<1x8x1x16xf32>,
    %cst_55 = arith.constant dense<0.000000e+00> : vector<8xf32>
    %53 = vector.multi_reduction <add>, %49, %cst_55 [1] : vector<8x16xf32> to vector<8xf32>
    %54 = vector.shape_cast %53 : vector<8xf32> to vector<8x1xf32>
    %55 = arith.addf %28, %54 : vector<8x1xf32>
    %56 = arith.mulf %49, %49 : vector<8x16xf32>
    %cst_56 = arith.constant dense<0.000000e+00> : vector<8xf32>
    %57 = vector.multi_reduction <add>, %56, %cst_56 [1] : vector<8x16xf32> to vector<8xf32>
    %58 = vector.shape_cast %57 : vector<8xf32> to vector<8x1xf32>
    %59 = arith.addf %32, %58 : vector<8x1xf32>
    %cst_57 = arith.constant 0.000000e+00 : f32
    %60 = vector.broadcast %cst_57 : f32 to vector<8x16xf32>
    %c0_58 = arith.constant 0 : index
    %c0_59 = arith.constant 0 : index
    %c3_60 = arith.constant 3 : index
    %c0_61 = arith.constant 0 : index
    %61 = vector.load %arg1[%c0_58, %c0_59, %c3_60, %c0_61] : memref<1x4x16x16xf32, #tpu.memory_space<vmem>>, vector<1x4x1x16xf32>
    %62 = vector.shape_cast %61 : vector<1x4x1x16xf32> to vector<4x16xf32>
    %cst_62 = arith.constant dense<0.000000e+00> : vector<8x16xf32>
    %63 = tpu.matmul %1, %62, %cst_62 {dimension_numbers = #tpu.dot_dimension_numbers<[1], [0], [0], [1], [0, 0, 1, 1], [], []>} : vector<8x4xf32>, vector<4x16xf32>, vector<8x16xf32> -> vector<8x16xf32>
    %64 = arith.addf %60, %63 : vector<8x16xf32>
    %c0_63 = arith.constant 0 : index
    %c0_64 = arith.constant 0 : index
    %c4_65 = arith.constant 4 : index
    %c0_66 = arith.constant 0 : index
    %65 = vector.load %arg1[%c0_63, %c0_64, %c4_65, %c0_66] : memref<1x4x16x16xf32, #tpu.memory_space<vmem>>, vector<1x4x1x16xf32>
    %66 = vector.shape_cast %65 : vector<1x4x1x16xf32> to vector<4x16xf32>
    %cst_67 = arith.constant dense<0.000000e+00> : vector<8x16xf32>
    %67 = tpu.matmul %3, %66, %cst_67 {dimension_numbers = #tpu.dot_dimension_numbers<[1], [0], [0], [1], [0, 0, 1, 1], [], []>} : vector<8x4xf32>, vector<4x16xf32>, vector<8x16xf32> -> vector<8x16xf32>
    %68 = arith.addf %64, %67 : vector<8x16xf32>
    %c0_68 = arith.constant 0 : index
    %c0_69 = arith.constant 0 : index
    %c5 = arith.constant 5 : index
    %c0_70 = arith.constant 0 : index
    %69 = vector.load %arg1[%c0_68, %c0_69, %c5, %c0_70] : memref<1x4x16x16xf32, #tpu.memory_space<vmem>>, vector<1x4x1x16xf32>
    %70 = vector.shape_cast %69 : vector<1x4x1x16xf32> to vector<4x16xf32>
    %cst_71 = arith.constant dense<0.000000e+00> : vector<8x16xf32>
    %71 = tpu.matmul %5, %70, %cst_71 {dimension_numbers = #tpu.dot_dimension_numbers<[1], [0], [0], [1], [0, 0, 1, 1], [], []>} : vector<8x4xf32>, vector<4x16xf32>, vector<8x16xf32> -> vector<8x16xf32>
    %72 = arith.addf %68, %71 : vector<8x16xf32>
    %c0_72 = arith.constant 0 : index
    %c0_73 = arith.constant 0 : index
    %c6 = arith.constant 6 : index
    %c0_74 = arith.constant 0 : index
    %73 = vector.load %arg1[%c0_72, %c0_73, %c6, %c0_74] : memref<1x4x16x16xf32, #tpu.memory_space<vmem>>, vector<1x4x1x16xf32>
    %74 = vector.shape_cast %73 : vector<1x4x1x16xf32> to vector<4x16xf32>
    %cst_75 = arith.constant dense<0.000000e+00> : vector<8x16xf32>
    %75 = tpu.matmul %7, %74, %cst_75 {dimension_numbers = #tpu.dot_dimension_numbers<[1], [0], [0], [1], [0, 0, 1, 1], [], []>} : vector<8x4xf32>, vector<4x16xf32>, vector<8x16xf32> -> vector<8x16xf32>
    %76 = arith.addf %72, %75 : vector<8x16xf32>
    %c0_76 = arith.constant 0 : index
    %c0_77 = arith.constant 0 : index
    %c2_78 = arith.constant 2 : index
    %c0_79 = arith.constant 0 : index
    %77 = vector.load %arg3[%c0_76, %c0_77, %c2_78, %c0_79] : memref<1x8x8x16xf32, #tpu.memory_space<vmem>>, vector<1x8x1x16xf32>
    %78 = vector.shape_cast %77 : vector<1x8x1x16xf32> to vector<8x16xf32>
    %79 = vector.shape_cast %76 : vector<8x16xf32> to vector<1x8x1x16xf32>
    tpu.vector_store %arg3[%c0_76, %c0_77, %c2_78, %c0_79], %79 {strides = array<i32>} : memref<1x8x8x16xf32, #tpu.memory_space<vmem>>, vector<1x8x1x16xf32>,
    %cst_80 = arith.constant dense<0.000000e+00> : vector<8xf32>
    %80 = vector.multi_reduction <add>, %76, %cst_80 [1] : vector<8x16xf32> to vector<8xf32>
    %81 = vector.shape_cast %80 : vector<8xf32> to vector<8x1xf32>
    %82 = arith.addf %55, %81 : vector<8x1xf32>
    %83 = arith.mulf %76, %76 : vector<8x16xf32>
    %cst_81 = arith.constant dense<0.000000e+00> : vector<8xf32>
    %84 = vector.multi_reduction <add>, %83, %cst_81 [1] : vector<8x16xf32> to vector<8xf32>
    %85 = vector.shape_cast %84 : vector<8xf32> to vector<8x1xf32>
    %86 = arith.addf %59, %85 : vector<8x1xf32>
    %cst_82 = arith.constant 0.000000e+00 : f32
    %87 = vector.broadcast %cst_82 : f32 to vector<8x16xf32>
    %c0_83 = arith.constant 0 : index
    %c0_84 = arith.constant 0 : index
    %c5_85 = arith.constant 5 : index
    %c0_86 = arith.constant 0 : index
    %88 = vector.load %arg1[%c0_83, %c0_84, %c5_85, %c0_86] : memref<1x4x16x16xf32, #tpu.memory_space<vmem>>, vector<1x4x1x16xf32>
    %89 = vector.shape_cast %88 : vector<1x4x1x16xf32> to vector<4x16xf32>
    %cst_87 = arith.constant dense<0.000000e+00> : vector<8x16xf32>
    %90 = tpu.matmul %1, %89, %cst_87 {dimension_numbers = #tpu.dot_dimension_numbers<[1], [0], [0], [1], [0, 0, 1, 1], [], []>} : vector<8x4xf32>, vector<4x16xf32>, vector<8x16xf32> -> vector<8x16xf32>
    %91 = arith.addf %87, %90 : vector<8x16xf32>
    %c0_88 = arith.constant 0 : index
    %c0_89 = arith.constant 0 : index
    %c6_90 = arith.constant 6 : index
    %c0_91 = arith.constant 0 : index
    %92 = vector.load %arg1[%c0_88, %c0_89, %c6_90, %c0_91] : memref<1x4x16x16xf32, #tpu.memory_space<vmem>>, vector<1x4x1x16xf32>
    %93 = vector.shape_cast %92 : vector<1x4x1x16xf32> to vector<4x16xf32>
    %cst_92 = arith.constant dense<0.000000e+00> : vector<8x16xf32>
    %94 = tpu.matmul %3, %93, %cst_92 {dimension_numbers = #tpu.dot_dimension_numbers<[1], [0], [0], [1], [0, 0, 1, 1], [], []>} : vector<8x4xf32>, vector<4x16xf32>, vector<8x16xf32> -> vector<8x16xf32>
    %95 = arith.addf %91, %94 : vector<8x16xf32>
    %c0_93 = arith.constant 0 : index
    %c0_94 = arith.constant 0 : index
    %c7 = arith.constant 7 : index
    %c0_95 = arith.constant 0 : index
    %96 = vector.load %arg1[%c0_93, %c0_94, %c7, %c0_95] : memref<1x4x16x16xf32, #tpu.memory_space<vmem>>, vector<1x4x1x16xf32>
    %97 = vector.shape_cast %96 : vector<1x4x1x16xf32> to vector<4x16xf32>
    %cst_96 = arith.constant dense<0.000000e+00> : vector<8x16xf32>
    %98 = tpu.matmul %5, %97, %cst_96 {dimension_numbers = #tpu.dot_dimension_numbers<[1], [0], [0], [1], [0, 0, 1, 1], [], []>} : vector<8x4xf32>, vector<4x16xf32>, vector<8x16xf32> -> vector<8x16xf32>
    %99 = arith.addf %95, %98 : vector<8x16xf32>
    %c0_97 = arith.constant 0 : index
    %c0_98 = arith.constant 0 : index
    %c8 = arith.constant 8 : index
    %c0_99 = arith.constant 0 : index
    %100 = vector.load %arg1[%c0_97, %c0_98, %c8, %c0_99] : memref<1x4x16x16xf32, #tpu.memory_space<vmem>>, vector<1x4x1x16xf32>
    %101 = vector.shape_cast %100 : vector<1x4x1x16xf32> to vector<4x16xf32>
    %cst_100 = arith.constant dense<0.000000e+00> : vector<8x16xf32>
    %102 = tpu.matmul %7, %101, %cst_100 {dimension_numbers = #tpu.dot_dimension_numbers<[1], [0], [0], [1], [0, 0, 1, 1], [], []>} : vector<8x4xf32>, vector<4x16xf32>, vector<8x16xf32> -> vector<8x16xf32>
    %103 = arith.addf %99, %102 : vector<8x16xf32>
    %c0_101 = arith.constant 0 : index
    %c0_102 = arith.constant 0 : index
    %c3_103 = arith.constant 3 : index
    %c0_104 = arith.constant 0 : index
    %104 = vector.load %arg3[%c0_101, %c0_102, %c3_103, %c0_104] : memref<1x8x8x16xf32, #tpu.memory_space<vmem>>, vector<1x8x1x16xf32>
    %105 = vector.shape_cast %104 : vector<1x8x1x16xf32> to vector<8x16xf32>
    %106 = vector.shape_cast %103 : vector<8x16xf32> to vector<1x8x1x16xf32>
    tpu.vector_store %arg3[%c0_101, %c0_102, %c3_103, %c0_104], %106 {strides = array<i32>} : memref<1x8x8x16xf32, #tpu.memory_space<vmem>>, vector<1x8x1x16xf32>,
    %cst_105 = arith.constant dense<0.000000e+00> : vector<8xf32>
    %107 = vector.multi_reduction <add>, %103, %cst_105 [1] : vector<8x16xf32> to vector<8xf32>
    %108 = vector.shape_cast %107 : vector<8xf32> to vector<8x1xf32>
    %109 = arith.addf %82, %108 : vector<8x1xf32>
    %110 = arith.mulf %103, %103 : vector<8x16xf32>
    %cst_106 = arith.constant dense<0.000000e+00> : vector<8xf32>
    %111 = vector.multi_reduction <add>, %110, %cst_106 [1] : vector<8x16xf32> to vector<8xf32>
    %112 = vector.shape_cast %111 : vector<8xf32> to vector<8x1xf32>
    %113 = arith.addf %86, %112 : vector<8x1xf32>
    %cst_107 = arith.constant 0.000000e+00 : f32
    %114 = vector.broadcast %cst_107 : f32 to vector<8x16xf32>
    %c0_108 = arith.constant 0 : index
    %c0_109 = arith.constant 0 : index
    %c7_110 = arith.constant 7 : index
    %c0_111 = arith.constant 0 : index
    %115 = vector.load %arg1[%c0_108, %c0_109, %c7_110, %c0_111] : memref<1x4x16x16xf32, #tpu.memory_space<vmem>>, vector<1x4x1x16xf32>
    %116 = vector.shape_cast %115 : vector<1x4x1x16xf32> to vector<4x16xf32>
    %cst_112 = arith.constant dense<0.000000e+00> : vector<8x16xf32>
    %117 = tpu.matmul %1, %116, %cst_112 {dimension_numbers = #tpu.dot_dimension_numbers<[1], [0], [0], [1], [0, 0, 1, 1], [], []>} : vector<8x4xf32>, vector<4x16xf32>, vector<8x16xf32> -> vector<8x16xf32>
    %118 = arith.addf %114, %117 : vector<8x16xf32>
    %c0_113 = arith.constant 0 : index
    %c0_114 = arith.constant 0 : index
    %c8_115 = arith.constant 8 : index
    %c0_116 = arith.constant 0 : index
    %119 = vector.load %arg1[%c0_113, %c0_114, %c8_115, %c0_116] : memref<1x4x16x16xf32, #tpu.memory_space<vmem>>, vector<1x4x1x16xf32>
    %120 = vector.shape_cast %119 : vector<1x4x1x16xf32> to vector<4x16xf32>
    %cst_117 = arith.constant dense<0.000000e+00> : vector<8x16xf32>
    %121 = tpu.matmul %3, %120, %cst_117 {dimension_numbers = #tpu.dot_dimension_numbers<[1], [0], [0], [1], [0, 0, 1, 1], [], []>} : vector<8x4xf32>, vector<4x16xf32>, vector<8x16xf32> -> vector<8x16xf32>
    %122 = arith.addf %118, %121 : vector<8x16xf32>
    %c0_118 = arith.constant 0 : index
    %c0_119 = arith.constant 0 : index
    %c9 = arith.constant 9 : index
    %c0_120 = arith.constant 0 : index
    %123 = vector.load %arg1[%c0_118, %c0_119, %c9, %c0_120] : memref<1x4x16x16xf32, #tpu.memory_space<vmem>>, vector<1x4x1x16xf32>
    %124 = vector.shape_cast %123 : vector<1x4x1x16xf32> to vector<4x16xf32>
    %cst_121 = arith.constant dense<0.000000e+00> : vector<8x16xf32>
    %125 = tpu.matmul %5, %124, %cst_121 {dimension_numbers = #tpu.dot_dimension_numbers<[1], [0], [0], [1], [0, 0, 1, 1], [], []>} : vector<8x4xf32>, vector<4x16xf32>, vector<8x16xf32> -> vector<8x16xf32>
    %126 = arith.addf %122, %125 : vector<8x16xf32>
    %c0_122 = arith.constant 0 : index
    %c0_123 = arith.constant 0 : index
    %c10 = arith.constant 10 : index
    %c0_124 = arith.constant 0 : index
    %127 = vector.load %arg1[%c0_122, %c0_123, %c10, %c0_124] : memref<1x4x16x16xf32, #tpu.memory_space<vmem>>, vector<1x4x1x16xf32>
    %128 = vector.shape_cast %127 : vector<1x4x1x16xf32> to vector<4x16xf32>
    %cst_125 = arith.constant dense<0.000000e+00> : vector<8x16xf32>
    %129 = tpu.matmul %7, %128, %cst_125 {dimension_numbers = #tpu.dot_dimension_numbers<[1], [0], [0], [1], [0, 0, 1, 1], [], []>} : vector<8x4xf32>, vector<4x16xf32>, vector<8x16xf32> -> vector<8x16xf32>
    %130 = arith.addf %126, %129 : vector<8x16xf32>
    %c0_126 = arith.constant 0 : index
    %c0_127 = arith.constant 0 : index
    %c4_128 = arith.constant 4 : index
    %c0_129 = arith.constant 0 : index
    %131 = vector.load %arg3[%c0_126, %c0_127, %c4_128, %c0_129] : memref<1x8x8x16xf32, #tpu.memory_space<vmem>>, vector<1x8x1x16xf32>
    %132 = vector.shape_cast %131 : vector<1x8x1x16xf32> to vector<8x16xf32>
    %133 = vector.shape_cast %130 : vector<8x16xf32> to vector<1x8x1x16xf32>
    tpu.vector_store %arg3[%c0_126, %c0_127, %c4_128, %c0_129], %133 {strides = array<i32>} : memref<1x8x8x16xf32, #tpu.memory_space<vmem>>, vector<1x8x1x16xf32>,
    %cst_130 = arith.constant dense<0.000000e+00> : vector<8xf32>
    %134 = vector.multi_reduction <add>, %130, %cst_130 [1] : vector<8x16xf32> to vector<8xf32>
    %135 = vector.shape_cast %134 : vector<8xf32> to vector<8x1xf32>
    %136 = arith.addf %109, %135 : vector<8x1xf32>
    %137 = arith.mulf %130, %130 : vector<8x16xf32>
    %cst_131 = arith.constant dense<0.000000e+00> : vector<8xf32>
    %138 = vector.multi_reduction <add>, %137, %cst_131 [1] : vector<8x16xf32> to vector<8xf32>
    %139 = vector.shape_cast %138 : vector<8xf32> to vector<8x1xf32>
    %140 = arith.addf %113, %139 : vector<8x1xf32>
    %cst_132 = arith.constant 0.000000e+00 : f32
    %141 = vector.broadcast %cst_132 : f32 to vector<8x16xf32>
    %c0_133 = arith.constant 0 : index
    %c0_134 = arith.constant 0 : index
    %c9_135 = arith.constant 9 : index
    %c0_136 = arith.constant 0 : index
    %142 = vector.load %arg1[%c0_133, %c0_134, %c9_135, %c0_136] : memref<1x4x16x16xf32, #tpu.memory_space<vmem>>, vector<1x4x1x16xf32>
    %143 = vector.shape_cast %142 : vector<1x4x1x16xf32> to vector<4x16xf32>
    %cst_137 = arith.constant dense<0.000000e+00> : vector<8x16xf32>
    %144 = tpu.matmul %1, %143, %cst_137 {dimension_numbers = #tpu.dot_dimension_numbers<[1], [0], [0], [1], [0, 0, 1, 1], [], []>} : vector<8x4xf32>, vector<4x16xf32>, vector<8x16xf32> -> vector<8x16xf32>
    %145 = arith.addf %141, %144 : vector<8x16xf32>
    %c0_138 = arith.constant 0 : index
    %c0_139 = arith.constant 0 : index
    %c10_140 = arith.constant 10 : index
    %c0_141 = arith.constant 0 : index
    %146 = vector.load %arg1[%c0_138, %c0_139, %c10_140, %c0_141] : memref<1x4x16x16xf32, #tpu.memory_space<vmem>>, vector<1x4x1x16xf32>
    %147 = vector.shape_cast %146 : vector<1x4x1x16xf32> to vector<4x16xf32>
    %cst_142 = arith.constant dense<0.000000e+00> : vector<8x16xf32>
    %148 = tpu.matmul %3, %147, %cst_142 {dimension_numbers = #tpu.dot_dimension_numbers<[1], [0], [0], [1], [0, 0, 1, 1], [], []>} : vector<8x4xf32>, vector<4x16xf32>, vector<8x16xf32> -> vector<8x16xf32>
    %149 = arith.addf %145, %148 : vector<8x16xf32>
    %c0_143 = arith.constant 0 : index
    %c0_144 = arith.constant 0 : index
    %c11 = arith.constant 11 : index
    %c0_145 = arith.constant 0 : index
    %150 = vector.load %arg1[%c0_143, %c0_144, %c11, %c0_145] : memref<1x4x16x16xf32, #tpu.memory_space<vmem>>, vector<1x4x1x16xf32>
    %151 = vector.shape_cast %150 : vector<1x4x1x16xf32> to vector<4x16xf32>
    %cst_146 = arith.constant dense<0.000000e+00> : vector<8x16xf32>
    %152 = tpu.matmul %5, %151, %cst_146 {dimension_numbers = #tpu.dot_dimension_numbers<[1], [0], [0], [1], [0, 0, 1, 1], [], []>} : vector<8x4xf32>, vector<4x16xf32>, vector<8x16xf32> -> vector<8x16xf32>
    %153 = arith.addf %149, %152 : vector<8x16xf32>
    %c0_147 = arith.constant 0 : index
    %c0_148 = arith.constant 0 : index
    %c12 = arith.constant 12 : index
    %c0_149 = arith.constant 0 : index
    %154 = vector.load %arg1[%c0_147, %c0_148, %c12, %c0_149] : memref<1x4x16x16xf32, #tpu.memory_space<vmem>>, vector<1x4x1x16xf32>
    %155 = vector.shape_cast %154 : vector<1x4x1x16xf32> to vector<4x16xf32>
    %cst_150 = arith.constant dense<0.000000e+00> : vector<8x16xf32>
    %156 = tpu.matmul %7, %155, %cst_150 {dimension_numbers = #tpu.dot_dimension_numbers<[1], [0], [0], [1], [0, 0, 1, 1], [], []>} : vector<8x4xf32>, vector<4x16xf32>, vector<8x16xf32> -> vector<8x16xf32>
    %157 = arith.addf %153, %156 : vector<8x16xf32>
    %c0_151 = arith.constant 0 : index
    %c0_152 = arith.constant 0 : index
    %c5_153 = arith.constant 5 : index
    %c0_154 = arith.constant 0 : index
    %158 = vector.load %arg3[%c0_151, %c0_152, %c5_153, %c0_154] : memref<1x8x8x16xf32, #tpu.memory_space<vmem>>, vector<1x8x1x16xf32>
    %159 = vector.shape_cast %158 : vector<1x8x1x16xf32> to vector<8x16xf32>
    %160 = vector.shape_cast %157 : vector<8x16xf32> to vector<1x8x1x16xf32>
    tpu.vector_store %arg3[%c0_151, %c0_152, %c5_153, %c0_154], %160 {strides = array<i32>} : memref<1x8x8x16xf32, #tpu.memory_space<vmem>>, vector<1x8x1x16xf32>,
    %cst_155 = arith.constant dense<0.000000e+00> : vector<8xf32>
    %161 = vector.multi_reduction <add>, %157, %cst_155 [1] : vector<8x16xf32> to vector<8xf32>
    %162 = vector.shape_cast %161 : vector<8xf32> to vector<8x1xf32>
    %163 = arith.addf %136, %162 : vector<8x1xf32>
    %164 = arith.mulf %157, %157 : vector<8x16xf32>
    %cst_156 = arith.constant dense<0.000000e+00> : vector<8xf32>
    %165 = vector.multi_reduction <add>, %164, %cst_156 [1] : vector<8x16xf32> to vector<8xf32>
    %166 = vector.shape_cast %165 : vector<8xf32> to vector<8x1xf32>
    %167 = arith.addf %140, %166 : vector<8x1xf32>
    %cst_157 = arith.constant 0.000000e+00 : f32
    %168 = vector.broadcast %cst_157 : f32 to vector<8x16xf32>
    %c0_158 = arith.constant 0 : index
    %c0_159 = arith.constant 0 : index
    %c11_160 = arith.constant 11 : index
    %c0_161 = arith.constant 0 : index
    %169 = vector.load %arg1[%c0_158, %c0_159, %c11_160, %c0_161] : memref<1x4x16x16xf32, #tpu.memory_space<vmem>>, vector<1x4x1x16xf32>
    %170 = vector.shape_cast %169 : vector<1x4x1x16xf32> to vector<4x16xf32>
    %cst_162 = arith.constant dense<0.000000e+00> : vector<8x16xf32>
    %171 = tpu.matmul %1, %170, %cst_162 {dimension_numbers = #tpu.dot_dimension_numbers<[1], [0], [0], [1], [0, 0, 1, 1], [], []>} : vector<8x4xf32>, vector<4x16xf32>, vector<8x16xf32> -> vector<8x16xf32>
    %172 = arith.addf %168, %171 : vector<8x16xf32>
    %c0_163 = arith.constant 0 : index
    %c0_164 = arith.constant 0 : index
    %c12_165 = arith.constant 12 : index
    %c0_166 = arith.constant 0 : index
    %173 = vector.load %arg1[%c0_163, %c0_164, %c12_165, %c0_166] : memref<1x4x16x16xf32, #tpu.memory_space<vmem>>, vector<1x4x1x16xf32>
    %174 = vector.shape_cast %173 : vector<1x4x1x16xf32> to vector<4x16xf32>
    %cst_167 = arith.constant dense<0.000000e+00> : vector<8x16xf32>
    %175 = tpu.matmul %3, %174, %cst_167 {dimension_numbers = #tpu.dot_dimension_numbers<[1], [0], [0], [1], [0, 0, 1, 1], [], []>} : vector<8x4xf32>, vector<4x16xf32>, vector<8x16xf32> -> vector<8x16xf32>
    %176 = arith.addf %172, %175 : vector<8x16xf32>
    %c0_168 = arith.constant 0 : index
    %c0_169 = arith.constant 0 : index
    %c13 = arith.constant 13 : index
    %c0_170 = arith.constant 0 : index
    %177 = vector.load %arg1[%c0_168, %c0_169, %c13, %c0_170] : memref<1x4x16x16xf32, #tpu.memory_space<vmem>>, vector<1x4x1x16xf32>
    %178 = vector.shape_cast %177 : vector<1x4x1x16xf32> to vector<4x16xf32>
    %cst_171 = arith.constant dense<0.000000e+00> : vector<8x16xf32>
    %179 = tpu.matmul %5, %178, %cst_171 {dimension_numbers = #tpu.dot_dimension_numbers<[1], [0], [0], [1], [0, 0, 1, 1], [], []>} : vector<8x4xf32>, vector<4x16xf32>, vector<8x16xf32> -> vector<8x16xf32>
    %180 = arith.addf %176, %179 : vector<8x16xf32>
    %c0_172 = arith.constant 0 : index
    %c0_173 = arith.constant 0 : index
    %c14 = arith.constant 14 : index
    %c0_174 = arith.constant 0 : index
    %181 = vector.load %arg1[%c0_172, %c0_173, %c14, %c0_174] : memref<1x4x16x16xf32, #tpu.memory_space<vmem>>, vector<1x4x1x16xf32>
    %182 = vector.shape_cast %181 : vector<1x4x1x16xf32> to vector<4x16xf32>
    %cst_175 = arith.constant dense<0.000000e+00> : vector<8x16xf32>
    %183 = tpu.matmul %7, %182, %cst_175 {dimension_numbers = #tpu.dot_dimension_numbers<[1], [0], [0], [1], [0, 0, 1, 1], [], []>} : vector<8x4xf32>, vector<4x16xf32>, vector<8x16xf32> -> vector<8x16xf32>
    %184 = arith.addf %180, %183 : vector<8x16xf32>
    %c0_176 = arith.constant 0 : index
    %c0_177 = arith.constant 0 : index
    %c6_178 = arith.constant 6 : index
    %c0_179 = arith.constant 0 : index
    %185 = vector.load %arg3[%c0_176, %c0_177, %c6_178, %c0_179] : memref<1x8x8x16xf32, #tpu.memory_space<vmem>>, vector<1x8x1x16xf32>
    %186 = vector.shape_cast %185 : vector<1x8x1x16xf32> to vector<8x16xf32>
    %187 = vector.shape_cast %184 : vector<8x16xf32> to vector<1x8x1x16xf32>
    tpu.vector_store %arg3[%c0_176, %c0_177, %c6_178, %c0_179], %187 {strides = array<i32>} : memref<1x8x8x16xf32, #tpu.memory_space<vmem>>, vector<1x8x1x16xf32>,
    %cst_180 = arith.constant dense<0.000000e+00> : vector<8xf32>
    %188 = vector.multi_reduction <add>, %184, %cst_180 [1] : vector<8x16xf32> to vector<8xf32>
    %189 = vector.shape_cast %188 : vector<8xf32> to vector<8x1xf32>
    %190 = arith.addf %163, %189 : vector<8x1xf32>
    %191 = arith.mulf %184, %184 : vector<8x16xf32>
    %cst_181 = arith.constant dense<0.000000e+00> : vector<8xf32>
    %192 = vector.multi_reduction <add>, %191, %cst_181 [1] : vector<8x16xf32> to vector<8xf32>
    %193 = vector.shape_cast %192 : vector<8xf32> to vector<8x1xf32>
    %194 = arith.addf %167, %193 : vector<8x1xf32>
    %cst_182 = arith.constant 0.000000e+00 : f32
    %195 = vector.broadcast %cst_182 : f32 to vector<8x16xf32>
    %c0_183 = arith.constant 0 : index
    %c0_184 = arith.constant 0 : index
    %c13_185 = arith.constant 13 : index
    %c0_186 = arith.constant 0 : index
    %196 = vector.load %arg1[%c0_183, %c0_184, %c13_185, %c0_186] : memref<1x4x16x16xf32, #tpu.memory_space<vmem>>, vector<1x4x1x16xf32>
    %197 = vector.shape_cast %196 : vector<1x4x1x16xf32> to vector<4x16xf32>
    %cst_187 = arith.constant dense<0.000000e+00> : vector<8x16xf32>
    %198 = tpu.matmul %1, %197, %cst_187 {dimension_numbers = #tpu.dot_dimension_numbers<[1], [0], [0], [1], [0, 0, 1, 1], [], []>} : vector<8x4xf32>, vector<4x16xf32>, vector<8x16xf32> -> vector<8x16xf32>
    %199 = arith.addf %195, %198 : vector<8x16xf32>
    %c0_188 = arith.constant 0 : index
    %c0_189 = arith.constant 0 : index
    %c14_190 = arith.constant 14 : index
    %c0_191 = arith.constant 0 : index
    %200 = vector.load %arg1[%c0_188, %c0_189, %c14_190, %c0_191] : memref<1x4x16x16xf32, #tpu.memory_space<vmem>>, vector<1x4x1x16xf32>
    %201 = vector.shape_cast %200 : vector<1x4x1x16xf32> to vector<4x16xf32>
    %cst_192 = arith.constant dense<0.000000e+00> : vector<8x16xf32>
    %202 = tpu.matmul %3, %201, %cst_192 {dimension_numbers = #tpu.dot_dimension_numbers<[1], [0], [0], [1], [0, 0, 1, 1], [], []>} : vector<8x4xf32>, vector<4x16xf32>, vector<8x16xf32> -> vector<8x16xf32>
    %203 = arith.addf %199, %202 : vector<8x16xf32>
    %c0_193 = arith.constant 0 : index
    %c0_194 = arith.constant 0 : index
    %c15 = arith.constant 15 : index
    %c0_195 = arith.constant 0 : index
    %204 = vector.load %arg1[%c0_193, %c0_194, %c15, %c0_195] : memref<1x4x16x16xf32, #tpu.memory_space<vmem>>, vector<1x4x1x16xf32>
    %205 = vector.shape_cast %204 : vector<1x4x1x16xf32> to vector<4x16xf32>
    %cst_196 = arith.constant dense<0.000000e+00> : vector<8x16xf32>
    %206 = tpu.matmul %5, %205, %cst_196 {dimension_numbers = #tpu.dot_dimension_numbers<[1], [0], [0], [1], [0, 0, 1, 1], [], []>} : vector<8x4xf32>, vector<4x16xf32>, vector<8x16xf32> -> vector<8x16xf32>
    %207 = arith.addf %203, %206 : vector<8x16xf32>
    %c0_197 = arith.constant 0 : index
    %c0_198 = arith.constant 0 : index
    %c7_199 = arith.constant 7 : index
    %c0_200 = arith.constant 0 : index
    %208 = vector.load %arg3[%c0_197, %c0_198, %c7_199, %c0_200] : memref<1x8x8x16xf32, #tpu.memory_space<vmem>>, vector<1x8x1x16xf32>
    %209 = vector.shape_cast %208 : vector<1x8x1x16xf32> to vector<8x16xf32>
    %210 = vector.shape_cast %207 : vector<8x16xf32> to vector<1x8x1x16xf32>
    tpu.vector_store %arg3[%c0_197, %c0_198, %c7_199, %c0_200], %210 {strides = array<i32>} : memref<1x8x8x16xf32, #tpu.memory_space<vmem>>, vector<1x8x1x16xf32>,
    %cst_201 = arith.constant dense<0.000000e+00> : vector<8xf32>
    %211 = vector.multi_reduction <add>, %207, %cst_201 [1] : vector<8x16xf32> to vector<8xf32>
    %212 = vector.shape_cast %211 : vector<8xf32> to vector<8x1xf32>
    %213 = arith.addf %190, %212 : vector<8x1xf32>
    %214 = arith.mulf %207, %207 : vector<8x16xf32>
    %cst_202 = arith.constant dense<0.000000e+00> : vector<8xf32>
    %215 = vector.multi_reduction <add>, %214, %cst_202 [1] : vector<8x16xf32> to vector<8xf32>
    %216 = vector.shape_cast %215 : vector<8xf32> to vector<8x1xf32>
    %217 = arith.addf %194, %216 : vector<8x1xf32>
    %c0_203 = arith.constant 0 : index
    %c0_204 = arith.constant 0 : index
    %c0_205 = arith.constant 0 : index
    %218 = vector.load %arg4[%c0_203, %c0_204, %c0_205] : memref<1x8x1xf32, #tpu.memory_space<vmem>>, vector<1x8x1xf32>
    %219 = vector.shape_cast %218 : vector<1x8x1xf32> to vector<8x1xf32>
    %220 = vector.shape_cast %213 : vector<8x1xf32> to vector<1x8x1xf32>
    tpu.vector_store %arg4[%c0_203, %c0_204, %c0_205], %220 {strides = array<i32>} : memref<1x8x1xf32, #tpu.memory_space<vmem>>, vector<1x8x1xf32>,
    %c0_206 = arith.constant 0 : index
    %c0_207 = arith.constant 0 : index
    %c0_208 = arith.constant 0 : index
    %221 = vector.load %arg5[%c0_206, %c0_207, %c0_208] : memref<1x8x1xf32, #tpu.memory_space<vmem>>, vector<1x8x1xf32>
    %222 = vector.shape_cast %221 : vector<1x8x1xf32> to vector<8x1xf32>
    %223 = vector.shape_cast %217 : vector<8x1xf32> to vector<1x8x1xf32>
    tpu.vector_store %arg5[%c0_206, %c0_207, %c0_208], %223 {strides = array<i32>} : memref<1x8x1xf32, #tpu.memory_space<vmem>>, vector<1x8x1xf32>,
    return
  }
  func.func @transform_0(%arg0: i32) -> (i32, i32, i32, i32) {
    %c0_i32 = arith.constant 0 : i32
    %c0_i32_0 = arith.constant 0 : i32
    %c0_i32_1 = arith.constant 0 : i32
    %c0_i32_2 = arith.constant 0 : i32
    return %arg0, %c0_i32, %c0_i32_0, %c0_i32_1 : i32, i32, i32, i32
  }
  func.func @transform_1(%arg0: i32) -> (i32, i32, i32) {
    %c0_i32 = arith.constant 0 : i32
    %c0_i32_0 = arith.constant 0 : i32
    %c0_i32_1 = arith.constant 0 : i32
    %c0_i32_2 = arith.constant 0 : i32
    return %c0_i32, %c0_i32_0, %c0_i32_1 : i32, i32, i32
  }
  func.func @transform_2(%arg0: i32) -> (i32, i32, i32, i32) {
    %c0_i32 = arith.constant 0 : i32
    %c0_i32_0 = arith.constant 0 : i32
    %c0_i32_1 = arith.constant 0 : i32
    %c0_i32_2 = arith.constant 0 : i32
    return %arg0, %c0_i32, %c0_i32_0, %c0_i32_1 : i32, i32, i32, i32
  }
  func.func @transform_3(%arg0: i32) -> (i32, i32, i32) {
    %c0_i32 = arith.constant 0 : i32
    %c0_i32_0 = arith.constant 0 : i32
    %c0_i32_1 = arith.constant 0 : i32
    return %arg0, %c0_i32, %c0_i32_0 : i32, i32, i32
  }
  func.func @transform_4(%arg0: i32) -> (i32, i32, i32) {
    %c0_i32 = arith.constant 0 : i32
    %c0_i32_0 = arith.constant 0 : i32
    %c0_i32_1 = arith.constant 0 : i32
    return %arg0, %c0_i32, %c0_i32_0 : i32, i32, i32
  }
}

module attributes {stable_mosaic.version = 11 : i64} {
  func.func @bn_lrelu_kernel(%arg0: i32, %arg1: memref<1x8x8x16xf32, #tpu.memory_space<vmem>>, %arg2: memref<1x8x1x1xf32, #tpu.memory_space<vmem>>, %arg3: memref<1x8x1x1xf32, #tpu.memory_space<vmem>>, %arg4: memref<1x8x8x16xf32, #tpu.memory_space<vmem>>) attributes {dimension_semantics = [#tpu.dimension_semantics<parallel>], iteration_bounds = array<i64: 2>, scalar_prefetch = 0 : i64, scratch_operands = 0 : i64, tpu.core_type = #tpu.core_type<tc>, window_params = [{transform_indices = @transform_0, window_bounds = array<i64: 1, 8, 8, 16>}, {pipeline_mode = #tpu.pipeline_mode<synchronous>, transform_indices = @transform_1, window_bounds = array<i64: 1, 8, 1, 1>}, {pipeline_mode = #tpu.pipeline_mode<synchronous>, transform_indices = @transform_2, window_bounds = array<i64: 1, 8, 1, 1>}, {transform_indices = @transform_3, window_bounds = array<i64: 1, 8, 8, 16>}]} {
    %c0 = arith.constant 0 : index
    %c0_0 = arith.constant 0 : index
    %c0_1 = arith.constant 0 : index
    %c0_2 = arith.constant 0 : index
    %0 = vector.load %arg1[%c0, %c0_0, %c0_1, %c0_2] : memref<1x8x8x16xf32, #tpu.memory_space<vmem>>, vector<1x8x8x16xf32>
    %c0_3 = arith.constant 0 : index
    %c0_4 = arith.constant 0 : index
    %c0_5 = arith.constant 0 : index
    %c0_6 = arith.constant 0 : index
    %1 = vector.load %arg2[%c0_3, %c0_4, %c0_5, %c0_6] : memref<1x8x1x1xf32, #tpu.memory_space<vmem>>, vector<1x8x1x1xf32>
    %2 = vector.broadcast %1 : vector<1x8x1x1xf32> to vector<1x8x8x16xf32>
    %3 = arith.mulf %0, %2 : vector<1x8x8x16xf32>
    %c0_7 = arith.constant 0 : index
    %c0_8 = arith.constant 0 : index
    %c0_9 = arith.constant 0 : index
    %c0_10 = arith.constant 0 : index
    %4 = vector.load %arg3[%c0_7, %c0_8, %c0_9, %c0_10] : memref<1x8x1x1xf32, #tpu.memory_space<vmem>>, vector<1x8x1x1xf32>
    %5 = vector.broadcast %4 : vector<1x8x1x1xf32> to vector<1x8x8x16xf32>
    %6 = arith.addf %3, %5 : vector<1x8x8x16xf32>
    %cst = arith.constant 0.000000e+00 : f32
    %7 = vector.broadcast %cst : f32 to vector<1x8x8x16xf32>
    %8 = arith.cmpf oge, %6, %7 : vector<1x8x8x16xf32>
    %cst_11 = arith.constant 2.000000e-01 : f32
    %9 = vector.broadcast %cst_11 : f32 to vector<1x8x8x16xf32>
    %10 = arith.mulf %9, %6 : vector<1x8x8x16xf32>
    %11 = arith.select %8, %6, %10 : vector<1x8x8x16xi1>, vector<1x8x8x16xf32>
    %c0_12 = arith.constant 0 : index
    %c0_13 = arith.constant 0 : index
    %c0_14 = arith.constant 0 : index
    %c0_15 = arith.constant 0 : index
    %12 = vector.load %arg4[%c0_12, %c0_13, %c0_14, %c0_15] : memref<1x8x8x16xf32, #tpu.memory_space<vmem>>, vector<1x8x8x16xf32>
    tpu.vector_store %arg4[%c0_12, %c0_13, %c0_14, %c0_15], %11 {strides = array<i32>} : memref<1x8x8x16xf32, #tpu.memory_space<vmem>>, vector<1x8x8x16xf32>,
    return
  }
  func.func @transform_0(%arg0: i32) -> (i32, i32, i32, i32) {
    %c0_i32 = arith.constant 0 : i32
    %c0_i32_0 = arith.constant 0 : i32
    %c0_i32_1 = arith.constant 0 : i32
    %c0_i32_2 = arith.constant 0 : i32
    return %arg0, %c0_i32, %c0_i32_0, %c0_i32_1 : i32, i32, i32, i32
  }
  func.func @transform_1(%arg0: i32) -> (i32, i32, i32, i32) {
    %c0_i32 = arith.constant 0 : i32
    %c0_i32_0 = arith.constant 0 : i32
    %c0_i32_1 = arith.constant 0 : i32
    %c0_i32_2 = arith.constant 0 : i32
    %c0_i32_3 = arith.constant 0 : i32
    return %c0_i32, %c0_i32_0, %c0_i32_1, %c0_i32_2 : i32, i32, i32, i32
  }
  func.func @transform_2(%arg0: i32) -> (i32, i32, i32, i32) {
    %c0_i32 = arith.constant 0 : i32
    %c0_i32_0 = arith.constant 0 : i32
    %c0_i32_1 = arith.constant 0 : i32
    %c0_i32_2 = arith.constant 0 : i32
    %c0_i32_3 = arith.constant 0 : i32
    return %c0_i32, %c0_i32_0, %c0_i32_1, %c0_i32_2 : i32, i32, i32, i32
  }
  func.func @transform_3(%arg0: i32) -> (i32, i32, i32, i32) {
    %c0_i32 = arith.constant 0 : i32
    %c0_i32_0 = arith.constant 0 : i32
    %c0_i32_1 = arith.constant 0 : i32
    %c0_i32_2 = arith.constant 0 : i32
    return %arg0, %c0_i32, %c0_i32_0, %c0_i32_1 : i32, i32, i32, i32
  }
}

</mosaic_0001>

<bundles_post_ra>
// kernel: downsample_forward.3
= control target key start
LH: loop header
LB: loop body
LE: loop exit
PB: predicated region body
PF: predicated region fallthrough
CT: control target
= control target key end

     0   :  { %8 = vsyncpa [#allocation3], 0  ;;  %s808_s0 = inlined_call_operand.vmem [shape: f32[2,8,8,16], index: 0, kind: input, shape index: {}]   ;;  %s809_s1 = inlined_call_operand.vmem [shape: f32[1,8,1,1], index: 1, kind: input, shape index: {}]   ;;  %s810_s2 = inlined_call_operand.vmem [shape: f32[1,8,1,1], index: 2, kind: input, shape index: {}]   ;;  %s811_s3 = inlined_call_operand.hbm [shape: f32[2,8,8,16], index: 3, kind: output, shape index: {}]  }
   0x1   :  { %10 = vsyncpa [#allocation3 + $0x1], 0  ;;  %s624_s12 = smov 0   ;;  %s626_s13 = smov 0  }
   0x2   :  { %s628_s14 = smov 0   ;;  %s630_s15 = smov 0  }
   0x3 LB: > { %s645_s16 = sadd.s32 4294967295, %s598_s15   ;;  %s462_s17 = sadd.s32 4294967294, %s598_s15   ;;  %s598_s15 = sphi %s630_s15, %s817_s15   ;;  %s594_s14 = sphi %s628_s14, %s816_s14   ;;  %s590_s13 = sphi %s626_s13, %s815_s13   ;;  %s586_s12 = sphi %s624_s12, %s814_s12  }
   0x4   : > { %s649_s18 = sadd.s32 1, %s598_s15   ;;  %s91_s19 = sadd.s32 1, %s594_s14 }
   0x5   : > { %s88_s20 = ssub.s32 %s598_s15, %s649_s18  ;;  %p101_p0 = scmp.ne.s32.totalorder %s594_s14, %s590_s13 }
   0x6   : > { %p89_p1 = scmp.eq.s32.totalorder %s88_s20, 0  ;;  %p102_p2 = scmp.eq.s32.totalorder %s645_s16, 1 }
   0x7   : > { %p107_p3 = scmp.ne.s32.totalorder %s590_s13, %s586_s12  ;;  %p108_p4 = scmp.eq.s32.totalorder %s462_s17, 1 }
   0x8   : > { %s660_s21 = scalar_select %p89_p1, %s594_s14, %s91_s19  }
   0x9   : > { %p662_p5 = por %p102_p2, %p101_p0  ;;  %p666_p6 = por %p108_p4, %p107_p3 }
   0xa   : > { %p465_p7 = scmp.ge.s32.totalorder %s598_s15, 1  ;;  %p140_p8 = scmp.lt.s32.totalorder %s598_s15, 3 }
   0xc   : > { %p141_p9 = pnand %p465_p7, %p140_p8 }
   0xd   : > { %v471_v0 = vld [vmem:[%s809_s1 + $0x2] ss:$0 sm:$0xff] (!%p141_p9)  ;;  %v469_v1 = vld [vmem:[%s809_s1] ss:$0 sm:$0xff] (!%p141_p9)  ;;  %v600_v2 = vmov (!%p141_p9), 0   ;;  %p164_p10 = scmp.lt.s32.totalorder (!%p141_p9), %s645_s16, 1 }
   0xe   : > { %144 = sbr.rel (%p141_p9) target bundleno = 191 (0xbf), region = 32  ;;  %535 = vset.pattern.permute.xlu1 (!%p141_p9), %v600_v2  ;;  %534 = vset.pattern.permute.xlu0 (!%p141_p9), %v600_v2  ;;  %v472_v3 = vld [vmem:[%s809_s1 + $0x3] ss:$0 sm:$0xff] (!%p141_p9)  ;;  %v470_v4 = vld [vmem:[%s809_s1 + $0x1] ss:$0 sm:$0xff] (!%p141_p9)  ;;  %s161_s25 = sand.u32 (!%p141_p9), 1, %s590_s13  }
   0xf   : > { %234 = vperm.xlu1 (!%p141_p9), %535, %v471_v0   ;;  %226 = vperm.xlu0 (!%p141_p9), %534, %v469_v1   ;;  %v474_v5 = vld [vmem:[%s809_s1 + $0x5] ss:$0 sm:$0xff] (!%p141_p9)  ;;  %v473_v6 = vld [vmem:[%s809_s1 + $0x4] ss:$0 sm:$0xff] (!%p141_p9)  ;;  %v476_v7 = vld [vmem:[%s809_s1 + $0x7] ss:$0 sm:$0xff] (!%p141_p9) }
  0x10   : > { %v475_v8 = vld [vmem:[%s809_s1 + $0x6] ss:$0 sm:$0xff] (!%p141_p9)  ;;  %v478_v9 = vld [vmem:[%s810_s2 + $0x1] ss:$0 sm:$0xff] (!%p141_p9)  ;;  %v477_v10 = vld [vmem:[%s810_s2] ss:$0 sm:$0xff] (!%p141_p9) }
  0x11   : > { %v480_v11 = vld [vmem:[%s810_s2 + $0x3] ss:$0 sm:$0xff] (!%p141_p9)  ;;  %v479_v12 = vld [vmem:[%s810_s2 + $0x2] ss:$0 sm:$0xff] (!%p141_p9)  ;;  %v482_v13 = vld [vmem:[%s810_s2 + $0x5] ss:$0 sm:$0xff] (!%p141_p9) }
  0x12   : > { %v481_v14 = vld [vmem:[%s810_s2 + $0x4] ss:$0 sm:$0xff] (!%p141_p9)  ;;  %v484_v15 = vld [vmem:[%s810_s2 + $0x7] ss:$0 sm:$0xff] (!%p141_p9)  ;;  %v483_v16 = vld [vmem:[%s810_s2 + $0x6] ss:$0 sm:$0xff] (!%p141_p9) }
  0x13   : > { %238 = vperm.xlu1 (!%p141_p9), %535, %v472_v3   ;;  %230 = vperm.xlu0 (!%p141_p9), %534, %v470_v4   ;;  %s466_s26 = sshll.u32 (!%p141_p9), %s161_s25, 6  ;;  %vm377_vm0 = vcmask (!%p141_p9), 130048   ;;  %s491_s28 = sshll.u32 (!%p141_p9), %s645_s16, 10 }
  0x14   : > { %s738_s27 = scalar_lea.vmem (!%p141_p9), [#allocation2], %s466_s26  ;;  %s767_s5 = scalar_lea.sflag (!%p141_p9), [#allocation3], %s161_s25 }
  0x15   : > { %s165_s11 = scalar_select %p164_p10, %s645_s16, 1 }
  0x16   : > { %s400_s29 = sshll.u32 %s738_s27, 4  ;;  %s757_s16 = scalar_lea.hbm %s811_s3, %s491_s28  ;;  %s759_s29 = int_to_ptr.vmem [resolvable:$true] %s400_s29 }
  0x17   : > { %246 = vperm.xlu1 %535, %v474_v5   ;;  %242 = vperm.xlu0 %534, %v473_v6   ;;  %s490_s17 = sshll.u32 %s165_s11, 6  ;;  %s536_s6 = scalar_lea.vmem %s759_s29, 1024 }
  0x18   : > { %s725_s24 = scalar_lea.vmem %s808_s0, %s490_s17  ;;  %p537_p11 = scmp.ne.s32.totalorder %s759_s29, %s536_s6 }
  0x19   : > { %v169_v23 = vld [vmem:[%s725_s24] sm:$0xff]  ;;  %v170_v24 = vld [vmem:[%s725_s24 + $0x8] sm:$0xff]  ;;  %v171_v27 = vld [vmem:[%s725_s24 + $0x10] sm:$0xff]  ;;  %s601_s7 = smov [#allocation2]  }
  0x1a   : > { %v172_v29 = vld [vmem:[%s725_s24 + $0x18] sm:$0xff]  ;;  %v174_v37 = vld [vmem:[%s725_s24 + $0x28] sm:$0xff]  ;;  %v173_v38 = vld [vmem:[%s725_s24 + $0x20] sm:$0xff]  ;;  %p538_p12 = pnand %p537_p11, %p662_p5  ;;  %s540_s8 = sshll.u32 %s601_s7, 4  ;;  %s541_s8 = int_to_ptr.vmem [resolvable:$false] %s540_s8 }
  0x1b   : > { %254 = vperm.xlu1 %535, %v476_v7   ;;  %250 = vperm.xlu0 %534, %v475_v8   ;;  %v176_v49 = vld [vmem:[%s725_s24 + $0x38] sm:$0xff]  ;;  %v175_v50 = vld [vmem:[%s725_s24 + $0x30] sm:$0xff]  ;;  %s542_s9 = scalar_lea.vmem %s541_s8, 2048  ;;  %p543_p0 = scmp.lt.s32.totalorder %s759_s29, %s541_s8 }
  0x1c   : > { %p539_p13 = pneg %p538_p12  ;;  %p544_p1 = scmp.lt.s32.totalorder %s542_s9, %s536_s6 }
  0x1e   : > { %p545_p2 = por %p544_p1, %p543_p0 }
  0x1f   : > { %318 = vperm.xlu1 %535, %v478_v9   ;;  %314 = vperm.xlu0 %534, %v477_v10  }
  0x20   : > { %p546_p3 = pnand %p545_p2, %p539_p13 }
  0x23   : > { %326 = vperm.xlu1 %535, %v480_v11   ;;  %322 = vperm.xlu0 %534, %v479_v12  }
  0x27   : > { %334 = vperm.xlu1 %535, %v482_v13   ;;  %330 = vperm.xlu0 %534, %v481_v14  }
  0x2b   : > { %342 = vperm.xlu1 %535, %v484_v15   ;;  %338 = vperm.xlu0 %534, %v483_v16  }
  0x8e   : > { %v235_v17 = vpop.permute.xlu1 %234  ;;  %v227_v18 = vpop.permute.xlu0 %226 }
  0x8f   : > { %v257_v28 = vmul.f32 %v227_v18, %v169_v23  ;;  %v259_v35 = vmul.f32 %v235_v17, %v171_v27 }
  0x92   : > { %v239_v19 = vpop.permute.xlu1 %238  ;;  %v231_v20 = vpop.permute.xlu0 %230 }
  0x93   : > { %v258_v30 = vmul.f32 %v231_v20, %v170_v24  ;;  %v260_v36 = vmul.f32 %v239_v19, %v172_v29 }
  0x96   : > { %v247_v21 = vpop.permute.xlu1 %246  ;;  %v243_v22 = vpop.permute.xlu0 %242 }
  0x97   : > { %v262_v47 = vmul.f32 %v247_v21, %v174_v37  ;;  %v261_v48 = vmul.f32 %v243_v22, %v173_v38 }
  0x9a   : > { %v255_v25 = vpop.permute.xlu1 %254  ;;  %v251_v26 = vpop.permute.xlu0 %250 }
  0x9b   : > { %v264_v59 = vmul.f32 %v255_v25, %v176_v49  ;;  %v263_v60 = vmul.f32 %v251_v26, %v175_v50 }
  0x9e   : > { %v319_v31 = vpop.permute.xlu1 %318  ;;  %v315_v32 = vpop.permute.xlu0 %314 }
  0x9f   : > { %v346_v33 = vadd.f32 %v319_v31, %v258_v30  ;;  %v345_v34 = vadd.f32 %v315_v32, %v257_v28 }
  0xa1   : > { %vm354_vm1 = vcmp.ge.f32.partialorder %v346_v33, 0.0  ;;  %v362_v39 = vmul.f32 0.2, %v346_v33  ;;  %vm353_vm2 = vcmp.ge.f32.partialorder %v345_v34, 0.0  ;;  %v361_v40 = vmul.f32 0.2, %v345_v34 }
  0xa2   : > { %v327_v41 = vpop.permute.xlu1 %326  ;;  %v323_v42 = vpop.permute.xlu0 %322 }
  0xa3   : > { %v370_v43 = vsel %vm354_vm1, %v346_v33, %v362_v39  ;;  %v369_v44 = vsel %vm353_vm2, %v345_v34, %v361_v40  ;;  %v348_v45 = vadd.f32 %v327_v41, %v260_v36  ;;  %v347_v46 = vadd.f32 %v323_v42, %v259_v35 }
  0xa4   : > { %379 = vst.msk [vmem:[%s738_s27 + $0x8] sm:$0xff] %vm377_vm0, %v370_v43  ;;  %378 = vst.msk [vmem:[%s738_s27] sm:$0xff] %vm377_vm0, %v369_v44 }
  0xa5   : > { %vm356_vm3 = vcmp.ge.f32.partialorder %v348_v45, 0.0  ;;  %v364_v51 = vmul.f32 0.2, %v348_v45  ;;  %vm355_vm4 = vcmp.ge.f32.partialorder %v347_v46, 0.0  ;;  %v363_v52 = vmul.f32 0.2, %v347_v46 }
  0xa6   : > { %v335_v53 = vpop.permute.xlu1 %334  ;;  %v331_v54 = vpop.permute.xlu0 %330 }
  0xa7   : > { %v372_v55 = vsel %vm356_vm3, %v348_v45, %v364_v51  ;;  %v371_v56 = vsel %vm355_vm4, %v347_v46, %v363_v52  ;;  %v350_v57 = vadd.f32 %v335_v53, %v262_v47  ;;  %v349_v58 = vadd.f32 %v331_v54, %v261_v48 }
  0xa8   : > { %381 = vst.msk [vmem:[%s738_s27 + $0x18] sm:$0xff] %vm377_vm0, %v372_v55  ;;  %380 = vst.msk [vmem:[%s738_s27 + $0x10] sm:$0xff] %vm377_vm0, %v371_v56 }
  0xa9   : > { %vm358_vm5 = vcmp.ge.f32.partialorder %v350_v57, 0.0  ;;  %v366_v61 = vmul.f32 0.2, %v350_v57  ;;  %vm357_vm6 = vcmp.ge.f32.partialorder %v349_v58, 0.0  ;;  %v365_v62 = vmul.f32 0.2, %v349_v58 }
  0xaa   : > { %v343_v63 = vpop.permute.xlu1 %342  ;;  %v339_v0 = vpop.permute.xlu0 %338 }
  0xab   : > { %v374_v1 = vsel %vm358_vm5, %v350_v57, %v366_v61  ;;  %v373_v2 = vsel %vm357_vm6, %v349_v58, %v365_v62  ;;  %v352_v3 = vadd.f32 %v343_v63, %v264_v59  ;;  %v351_v4 = vadd.f32 %v339_v0, %v263_v60 }
  0xac   : > { %383 = vst.msk [vmem:[%s738_s27 + $0x28] sm:$0xff] %vm377_vm0, %v374_v1  ;;  %382 = vst.msk [vmem:[%s738_s27 + $0x20] sm:$0xff] %vm377_vm0, %v373_v2 }
  0xad   : > { %vm360_vm7 = vcmp.ge.f32.partialorder %v352_v3, 0.0  ;;  %v368_v5 = vmul.f32 0.2, %v352_v3  ;;  %vm359_vm8 = vcmp.ge.f32.partialorder %v351_v4, 0.0  ;;  %v367_v6 = vmul.f32 0.2, %v351_v4 }
  0xaf   : > { %v376_v7 = vsel %vm360_vm7, %v352_v3, %v368_v5  ;;  %v375_v8 = vsel %vm359_vm8, %v351_v4, %v367_v6 }
  0xb0   : > { %385 = vst.msk [vmem:[%s738_s27 + $0x38] sm:$0xff] %vm377_vm0, %v376_v7  ;;  %384 = vst.msk [vmem:[%s738_s27 + $0x30] sm:$0xff] %vm377_vm0, %v375_v8 }
  0xb1   : > { %549 = shalt.err (!%p546_p3)
}
  0xb2   : > { %s550_s10 = scalar_lea.hbm %s757_s16, 1024  ;;  %s554_s19 = scalar_lea.hbm %s811_s3, 2048 }
  0xb3   : > { %p551_p4 = scmp.ne.s32.totalorder %s757_s16, %s550_s10  ;;  %p555_p9 = scmp.lt.u32.totalorder %s757_s16, %s811_s3 }
  0xb4   : > { %p556_p10 = scmp.lt.u32.totalorder %s554_s19, %s550_s10  ;;  %p558_p12 = scmp.lt.u32.totalorder %s550_s10, %s757_s16 }
  0xb5   : > { %p552_p7 = pnand %p551_p4, %p662_p5 }
  0xb6   : > { %p557_p11 = por %p556_p10, %p555_p9 }
  0xb7   : > { %p553_p8 = pneg %p552_p7 }
  0xb8   : > { %p559_p13 = por %p558_p12, %p557_p11 }
  0xba   : > { %p560_p0 = pnand %p559_p13, %p553_p8 }
  0xbc   : > { %563 = shalt.err (!%p560_p0)
}
  0xbd   : > { %s602_s25 = smov 128   ;;  %s603_s26 = smov 8  }
  0xbe   : > { %492 = dma.vmem_to_hbm [thread:$0]  (%p662_p5), %s759_s29, 1024, %s757_s16, %s767_s5, %s602_s25, %s602_s25, %s603_s26  }
  0xbf PF: > { %p498_p1 = scmp.ge.s32.totalorder %s598_s15, 2  ;;  %s415_s27 = sand.u32 1, %s586_s12  }
  0xc0   : > { %s416_s28 = scalar_lea.sflag [#allocation3], %s415_s27 }
  0xc1   : > { %p495_p2 = pnand %p498_p1, %p666_p6 }
  0xc3   : > { %581 = dma.done.wait (!%p495_p2), %s416_s28, 1024  }
  0xc4   : > { %583 = vsyncadd (!%p495_p2), %s416_s28, 4294966272  ;;  %p13_p3 = scmp.ge.s32.totalorder %s649_s18, 4   ;;  %s814_s12 = smov %s590_s13 }
  0xc5   : > { %s815_s13 = smov %s594_s14  ;;  %s816_s14 = smov %s660_s21 }
  0xc6   : > { %s817_s15 = smov %s649_s18  ;;  %15 = sbr.rel (!%p13_p3) target bundleno = 3 (0x3), region = 67 }
  0xcd   :  { %421 = vsyncpa [#allocation3], 1 }
  0xce   :  { %423 = vsyncpa [#allocation3 + $0x1], 1 }

// kernel: downsample_forward.2
= control target key start
LH: loop header
LB: loop body
LE: loop exit
PB: predicated region body
PF: predicated region fallthrough
CT: control target
= control target key end

     0   :  { %10 = vsyncpa [#allocation3], 0  ;;  %s4858_s0 = inlined_call_operand.hbm [shape: f32[2,4,16,16], index: 0, kind: input, shape index: {}]   ;;  %s4859_s1 = inlined_call_operand.vmem [shape: f32[4,8,4], index: 1, kind: input, shape index: {}]   ;;  %s4860_s2 = inlined_call_operand.vmem [shape: f32[2,8,8,16], index: 2, kind: output, shape index: {0}]   ;;  %s4861_s3 = inlined_call_operand.vmem [shape: f32[2,8,1], index: 3, kind: output, shape index: {1}]   ;;  %s4862_s4 = inlined_call_operand.vmem [shape: f32[2,8,1], index: 4, kind: output, shape index: {2}]  }
   0x1   :  { %12 = vsyncpa [#allocation3 + $0x1], 0  ;;  %s4065_s15 = smov 0   ;;  %s4067_s16 = smov 0  }
   0x2   :  { %s4069_s17 = smov 0   ;;  %s4071_s18 = smov 0  }
   0x3 LB: > { %s4084_s19 = sadd.s32 4294967295, %s4032_s18   ;;  %s4087_s20 = sadd.s32 1, %s4032_s18   ;;  %s4032_s18 = sphi %s4071_s18, %s4869_s18   ;;  %s4028_s17 = sphi %s4069_s17, %s4868_s17   ;;  %s4024_s16 = sphi %s4067_s16, %s4867_s16   ;;  %s4020_s15 = sphi %s4065_s15, %s4866_s15  }
   0x4   : > { %s22_s21 = ssub.s32 %s4032_s18, %s4087_s20  ;;  %s25_s22 = sadd.s32 1, %s4028_s17 }
   0x5   : > { %p23_p0 = scmp.eq.s32.totalorder %s22_s21, 0  ;;  %p32_p1 = scmp.ne.s32.totalorder %s4028_s17, %s4024_s16 }
   0x6   : > { %p33_p2 = scmp.eq.s32.totalorder %s4032_s18, 0  ;;  %p38_p3 = scmp.ne.s32.totalorder %s4024_s16, %s4020_s15 }
   0x7   : > { %s4097_s23 = scalar_select %p23_p0, %s4028_s17, %s25_s22  }
   0x8   : > { %p34_p4 = por %p33_p2, %p32_p1  ;;  %p39_p5 = scmp.eq.s32.totalorder %s4084_s19, 0 }
   0x9   : > { %p3930_p6 = scmp.lt.s32.totalorder %s4032_s18, 2  ;;  %s164_s25 = sand.u32 1, %s4028_s17  }
   0xa   : > { %p4101_p7 = por %p39_p5, %p38_p3  ;;  %s3594_s26 = sshll.u32 %s164_s25, 6 }
   0xb   : > { %s3668_s27 = sshll.u32 %s4032_s18, 10  ;;  %s168_s5 = scalar_lea.vmem [#allocation2], %s3594_s26 }
   0xc   : > { %s4110_s30 = scalar_lea.hbm %s4858_s0, %s3668_s27  ;;  %s175_s6 = sshll.u32 %s168_s5, 4  ;;  %s4112_s6 = int_to_ptr.vmem [resolvable:$true] %s175_s6 }
   0xd   : > { %p4114_p8 = pnand %p3930_p6, %p34_p4  ;;  %s4119_s8 = scalar_lea.sflag [#allocation3], %s164_s25 }
   0xe   : > { %s3968_s9 = scalar_lea.hbm %s4110_s30, 1024  ;;  %s3973_s12 = scalar_lea.hbm %s4858_s0, 2048 }
   0xf   : > { %p3969_p10 = scmp.ne.s32.totalorder %s4110_s30, %s3968_s9  ;;  %p3970_p11 = pneg %p4114_p8 }
  0x10   : > { %p3974_p0 = scmp.lt.u32.totalorder %s4110_s30, %s4858_s0  ;;  %p3975_p1 = scmp.lt.u32.totalorder %s3973_s12, %s3968_s9 }
  0x11   : > { %p3971_p12 = pnand %p3970_p11, %p3969_p10  ;;  %p3977_p3 = scmp.lt.u32.totalorder %s3968_s9, %s4110_s30 }
  0x12   : > { %p3976_p2 = por %p3975_p1, %p3974_p0 }
  0x13   : > { %p3972_p13 = pneg %p3971_p12 }
  0x14   : > { %p3978_p4 = por %p3977_p3, %p3976_p2 }
  0x16   : > { %p3979_p5 = pnand %p3978_p4, %p3972_p13 }
  0x18   : > { %3982 = shalt.err (!%p3979_p5)
}
  0x19   : > { %s3983_s15 = scalar_lea.vmem %s4112_s6, 1024  ;;  %s4034_s21 = smov [#allocation2]  }
  0x1a   : > { %p3984_p6 = scmp.ne.s32.totalorder %s4112_s6, %s3983_s15  ;;  %s3988_s22 = sshll.u32 %s4034_s21, 4  ;;  %s3989_s22 = int_to_ptr.vmem [resolvable:$false] %s3988_s22 }
  0x1b   : > { %s3990_s25 = scalar_lea.vmem %s3989_s22, 2048  ;;  %p3991_p9 = scmp.lt.s32.totalorder %s4112_s6, %s3989_s22 }
  0x1c   : > { %p3986_p10 = pnand %p3984_p6, %p3970_p11  ;;  %p3992_p0 = scmp.lt.s32.totalorder %s3990_s25, %s3983_s15 }
  0x1e   : > { %p3987_p12 = pneg %p3986_p10  ;;  %p3993_p1 = por %p3992_p0, %p3991_p9 }
  0x20   : > { %p3994_p2 = pnand %p3993_p1, %p3987_p12 }
  0x22   : > { %3997 = shalt.err (!%p3994_p2)
}
  0x23   : > { %s4035_s26 = smov 128   ;;  %s4036_s27 = smov 8  }
  0x24   : > { %3929 = dma.hbm_to_vmem [thread:$0]  (!%p4114_p8), %s4110_s30, 1024, %s4112_s6, %s4119_s8, %s4035_s26, %s4035_s26, %s4036_s27  }
  0x25   : > { %p183_p11 = scmp.lt.s32.totalorder %s4032_s18, 3  ;;  %p4865_p13 = scmp.ge.s32.totalorder %s4032_s18, 1 }
  0x27   : > { %p184_p3 = pnand %p4865_p13, %p183_p11 }
  0x28   : > { %s189_s28 = sand.u32 (!%p184_p3), 1, %s4024_s16  }
  0x29   : > { %187 = sbr.rel (%p184_p3) target bundleno = 522 (0x20a), region = 28  ;;  %s3598_s29 = sshll.u32 (!%p184_p3), %s189_s28, 6 }
  0x2a   : > { %s190_s5 = scalar_lea.sflag (!%p184_p3), [#allocation3], %s189_s28  ;;  %s4151_s9 = scalar_lea.vmem (!%p184_p3), [#allocation2], %s3598_s29 }
  0x30   : > { %4015 = dma.done.wait (%p4101_p7), %s190_s5, 1024  }
  0x31   : > { %4017 = vsyncadd (%p4101_p7), %s190_s5, 4294966272  ;;  %v4037_v0 = vmov 0.0   ;;  %vm4038_vm0 = vmmov 0   ;;  %vm259_vm1 = vcmask 1041409   ;;  %vm262_vm2 = vcmask 1042434   ;;  %v4176_v17 = vld [vmem:[%s4859_s1 + $0x10] sm:$0xff] }
  0x32   : > { %3730 = vmatprep.subr.mxu0 %v4037_v0  ;;  %3745 = vmatprep.subr.mxu1 %v4037_v0  ;;  %vm265_vm3 = vcmask 1043459   ;;  %v250_v1 = vld [vmem:[%s4151_s9 + $0x1] sm:$0x1]  ;;  %v251_v2 = vld [vmem:[%s4151_s9 + $0x11] sm:$0x1]  ;;  %vm271_vm4 = vcmask 1043456  }
  0x33   : > { %3732 = vmatprep.mubr.msk.f32.mxu0 %vm4038_vm0, %v4037_v0  ;;  %3747 = vmatprep.mubr.msk.f32.mxu1 %vm4038_vm0, %v4037_v0  ;;  %v252_v3 = vld [vmem:[%s4151_s9 + $0x21] sm:$0x1]  ;;  %v253_v4 = vld [vmem:[%s4151_s9 + $0x31] sm:$0x1]  ;;  %v258_v5 = vrot.slane %v251_v2, 7  ;;  %vm267_vm5 = vcmask 31744  }
  0x34   : > { %v261_v6 = vrot.slane %v252_v3, 6  ;;  %v600_v7 = vld [vmem:[%s4151_s9 + $0x2] sm:$0x1]  ;;  %v264_v8 = vrot.slane %v253_v4, 5  ;;  %v601_v9 = vld [vmem:[%s4151_s9 + $0x12] sm:$0x1] }
  0x35   : > { %v602_v10 = vld [vmem:[%s4151_s9 + $0x22] sm:$0x1]  ;;  %v260_v11 = vsel %vm259_vm1, %v258_v5, %v250_v1  ;;  %v603_v12 = vld [vmem:[%s4151_s9 + $0x32] sm:$0x1]  ;;  %v608_v13 = vrot.slane %v601_v9, 7  ;;  %v4185_v22 = vld [vmem:[%s4859_s1 + $0x8] sm:$0xff] }
  0x36   : > { %v610_v14 = vrot.slane %v602_v10, 6  ;;  %v263_v15 = vsel %vm262_vm2, %v261_v6, %v260_v11  ;;  %v612_v16 = vrot.slane %v603_v12, 5  ;;  %v246_v18 = vld [vmem:[%s4151_s9] sm:$0x1]  ;;  %v247_v19 = vld [vmem:[%s4151_s9 + $0x10] sm:$0x1] }
  0x37   : > { %v266_v20 = vsel %vm265_vm3, %v264_v8, %v263_v15  ;;  %v609_v21 = vsel %vm259_vm1, %v608_v13, %v600_v7  ;;  %v248_v23 = vld [vmem:[%s4151_s9 + $0x20] sm:$0x1]  ;;  %v249_v24 = vld [vmem:[%s4151_s9 + $0x30] sm:$0x1]  ;;  %v348_v25 = vrot.slane %v247_v19, 7  ;;  %p226_p7 = scmp.lt.s32.totalorder %s4084_s19, 1 }
  0x38   : > { %3731 = vmatpush3.msk.msra.mxu0 %vm271_vm4, %v266_v20  ;;  %v611_v26 = vsel %vm262_vm2, %v610_v14, %v609_v21  ;;  %v350_v27 = vrot.slane %v248_v23, 6  ;;  %v352_v28 = vrot.slane %v249_v24, 5  ;;  %v596_v29 = vld [vmem:[%s4151_s9 + $0x1] sm:$0x1]  ;;  %v597_v30 = vld [vmem:[%s4151_s9 + $0x11] sm:$0x1] }
  0x39   : > { %v613_v31 = vsel %vm265_vm3, %v612_v16, %v611_v26  ;;  %3733 = vmatmul.mubr.msk.f32.vlgmr.msra.gmra.mrb[0].mxu0 %vm267_vm5, %v4176_v17  ;;  %3735 = vmatprep.subr.mxu0 %v4037_v0  ;;  %v349_v32 = vsel %vm259_vm1, %v348_v25, %v246_v18  ;;  %v598_v33 = vld [vmem:[%s4151_s9 + $0x21] sm:$0x1]  ;;  %v599_v34 = vld [vmem:[%s4151_s9 + $0x31] sm:$0x1]  ;;  %v690_v35 = vrot.slane %v597_v30, 7  ;;  %s4871_s19 = smov (!%p226_p7, %s4084_s19), 1 }
  0x3a   : > { %3746 = vmatpush3.msk.msra.mxu1 %vm271_vm4, %v613_v31  ;;  %v351_v36 = vsel %vm262_vm2, %v350_v27, %v349_v32  ;;  %v692_v37 = vrot.slane %v598_v33, 6  ;;  %v694_v38 = vrot.slane %v599_v34, 5  ;;  %3737 = vmatprep.mubr.msk.f32.mxu0 %vm4038_vm0, %v4037_v0  ;;  %v429_v39 = vld [vmem:[%s4151_s9 + $0x2] sm:$0x1]  ;;  %v430_v40 = vld [vmem:[%s4151_s9 + $0x12] sm:$0x1] }
  0x3b   : > { %3748 = vmatmul.mubr.msk.f32.vlgmr.msra.gmra.mrb[0].mxu1 %vm267_vm5, %v4185_v22  ;;  %v353_v41 = vsel %vm265_vm3, %v352_v28, %v351_v36  ;;  %3750 = vmatprep.subr.mxu1 %v4037_v0  ;;  %v691_v42 = vsel %vm259_vm1, %v690_v35, %v596_v29  ;;  %v431_v43 = vld [vmem:[%s4151_s9 + $0x22] sm:$0x1]  ;;  %v432_v44 = vld [vmem:[%s4151_s9 + $0x32] sm:$0x1]  ;;  %v437_v45 = vrot.slane %v430_v40, 7  ;;  %v4268_v28 = vld [vmem:[%s4859_s1 + $0x18] sm:$0xff] }
  0x3c   : > { %3736 = vmatpush3.msk.msra.mxu0 %vm271_vm4, %v353_v41  ;;  %v693_v46 = vsel %vm262_vm2, %v692_v37, %v691_v42  ;;  %3752 = vmatprep.mubr.msk.f32.mxu1 %vm4038_vm0, %v4037_v0  ;;  %v439_v47 = vrot.slane %v431_v43, 6  ;;  %v441_v48 = vrot.slane %v432_v44, 5  ;;  %v771_v49 = vld [vmem:[%s4151_s9 + $0x3] sm:$0x1]  ;;  %v772_v50 = vld [vmem:[%s4151_s9 + $0x13] sm:$0x1] }
  0x3d   : > { %v695_v51 = vsel %vm265_vm3, %v694_v38, %v693_v46  ;;  %3740 = vmatprep.subr.mxu0 %v4037_v0  ;;  %v438_v52 = vsel %vm259_vm1, %v437_v45, %v429_v39  ;;  %v773_v53 = vld [vmem:[%s4151_s9 + $0x23] sm:$0x1]  ;;  %v774_v54 = vld [vmem:[%s4151_s9 + $0x33] sm:$0x1]  ;;  %v779_v55 = vrot.slane %v772_v50, 7  ;;  %vm586_vm6 = vcmask 130048  }
  0x3e   : > { %3751 = vmatpush3.msk.msra.mxu1 %vm271_vm4, %v695_v51  ;;  %v440_v56 = vsel %vm262_vm2, %v439_v47, %v438_v52  ;;  %v781_v57 = vrot.slane %v773_v53, 6  ;;  %v783_v58 = vrot.slane %v774_v54, 5  ;;  %v1024_v59 = vld [vmem:[%s4151_s9 + $0x4] sm:$0x1]  ;;  %v1025_v60 = vld [vmem:[%s4151_s9 + $0x14] sm:$0x1] }
  0x3f   : > { %v442_v61 = vsel %vm265_vm3, %v441_v48, %v440_v56  ;;  %3755 = vmatprep.subr.mxu1 %v4037_v0  ;;  %v780_v62 = vsel %vm259_vm1, %v779_v55, %v771_v49  ;;  %v1026_v63 = vld [vmem:[%s4151_s9 + $0x24] sm:$0x1]  ;;  %v1027_v1 = vld [vmem:[%s4151_s9 + $0x34] sm:$0x1]  ;;  %v1032_v2 = vrot.slane %v1025_v60, 7  ;;  %s3669_s12 = sshll.u32 %s4871_s19, 6 }
  0x40   : > { %v4236_v3 = vld [vmem:[%s4859_s1] sm:$0xff]  ;;  %v782_v4 = vsel %vm262_vm2, %v781_v57, %v780_v62  ;;  %v1034_v5 = vrot.slane %v1026_v63, 6  ;;  %v859_v7 = vld [vmem:[%s4151_s9 + $0x14] sm:$0x1]  ;;  %v1021_v15 = vld [vmem:[%s4151_s9 + $0x13] sm:$0x1]  ;;  %s4646_s15 = scalar_lea.vmem %s4860_s2, %s3669_s12 }
  0x41   : > { %v858_v6 = vld [vmem:[%s4151_s9 + $0x4] sm:$0x1]  ;;  %3738 = vmatmul.mubr.msk.f32.vlgmr.msra.gmra.mrb[0].mxu0 %vm267_vm5, %v4185_v22  ;;  %v784_v8 = vsel %vm265_vm3, %v783_v58, %v782_v4  ;;  %v1033_v9 = vsel %vm259_vm1, %v1032_v2, %v1024_v59  ;;  %v861_v11 = vld [vmem:[%s4151_s9 + $0x34] sm:$0x1]  ;;  %v866_v12 = vrot.slane %v859_v7, 7  ;;  %v1036_v16 = vrot.slane %v1027_v1, 5 }
  0x42   : > { %v860_v10 = vld [vmem:[%s4151_s9 + $0x24] sm:$0x1]  ;;  %3741 = vmatpush3.msk.msra.mxu0 %vm271_vm4, %v442_v61  ;;  %3742 = vmatprep.mubr.msk.f32.mxu0 %vm4038_vm0, %v4037_v0  ;;  %v1020_v14 = vld [vmem:[%s4151_s9 + $0x3] sm:$0x1]  ;;  %v1114_v20 = vrot.slane %v1021_v15, 7  ;;  %v1035_v21 = vsel %vm262_vm2, %v1034_v5, %v1033_v9  ;;  %v870_v26 = vrot.slane %v861_v11, 5 }
  0x43   : > { %v868_v13 = vrot.slane %v860_v10, 6  ;;  %3753 = vmatmul.mubr.msk.f32.vlgmr.msra.gmra.mrb[0].mxu1 %vm267_vm5, %v4236_v3  ;;  %3765 = vmatprep.subr.mxu0 %v4037_v0  ;;  %v867_v18 = vsel %vm259_vm1, %v866_v12, %v858_v6  ;;  %v1022_v19 = vld [vmem:[%s4151_s9 + $0x23] sm:$0x1]  ;;  %v1023_v23 = vld [vmem:[%s4151_s9 + $0x33] sm:$0x1]  ;;  %v1037_v31 = vsel %vm265_vm3, %v1036_v16, %v1035_v21  ;;  %vm577_vm7 = vcmask 122880  }
  0x44   : > { %3756 = vmatpush3.msk.msra.mxu1 %vm271_vm4, %v784_v8  ;;  %3757 = vmatprep.mubr.msk.f32.mxu1 %vm4038_vm0, %v4037_v0  ;;  %v1116_v24 = vrot.slane %v1022_v19, 6  ;;  %v1446_v25 = vld [vmem:[%s4151_s9 + $0x16] sm:$0x1]  ;;  %v1115_v27 = vsel %vm259_vm1, %v1114_v20, %v1020_v14  ;;  %v1193_v30 = vld [vmem:[%s4151_s9 + $0x15] sm:$0x1]  ;;  %v1118_v32 = vrot.slane %v1023_v23, 5 }
  0x45   : > { %3760 = vmatprep.subr.mxu1 %v4037_v0  ;;  %v869_v29 = vsel %vm262_vm2, %v868_v13, %v867_v18  ;;  %v1447_v33 = vld [vmem:[%s4151_s9 + $0x26] sm:$0x1]  ;;  %v1453_v34 = vrot.slane %v1446_v25, 7  ;;  %v1442_v37 = vld [vmem:[%s4151_s9 + $0x15] sm:$0x1]  ;;  %v1200_v40 = vrot.slane %v1193_v30, 7 }
  0x46   : > { %v1117_v35 = vsel %vm262_vm2, %v1116_v24, %v1115_v27  ;;  %v1445_v36 = vld [vmem:[%s4151_s9 + $0x6] sm:$0x1]  ;;  %v871_v38 = vsel %vm265_vm3, %v870_v26, %v869_v29  ;;  %v1194_v39 = vld [vmem:[%s4151_s9 + $0x25] sm:$0x1]  ;;  %v1448_v41 = vld [vmem:[%s4151_s9 + $0x36] sm:$0x1] }
  0x47   : > { %v1455_v42 = vrot.slane %v1447_v33, 6  ;;  %v1192_v43 = vld [vmem:[%s4151_s9 + $0x5] sm:$0x1]  ;;  %v1119_v44 = vsel %vm265_vm3, %v1118_v32, %v1117_v35  ;;  %v1454_v45 = vsel %vm259_vm1, %v1453_v34, %v1445_v36  ;;  %v1535_v47 = vrot.slane %v1442_v37, 7  ;;  %v1195_v48 = vld [vmem:[%s4151_s9 + $0x35] sm:$0x1] }
  0x48   : > { %v1443_v46 = vld [vmem:[%s4151_s9 + $0x25] sm:$0x1]  ;;  %v1202_v49 = vrot.slane %v1194_v39, 6  ;;  %v1457_v51 = vrot.slane %v1448_v41, 5  ;;  %v1201_v52 = vsel %vm259_vm1, %v1200_v40, %v1192_v43  ;;  %v1444_v53 = vld [vmem:[%s4151_s9 + $0x35] sm:$0x1] }
  0x49   : > { %3743 = vmatmul.mubr.msk.f32.vlgmr.msra.gmra.mrb[0].mxu0 %vm267_vm5, %v4268_v28  ;;  %v1441_v50 = vld [vmem:[%s4151_s9 + $0x5] sm:$0x1]  ;;  %v1280_v54 = vld [vmem:[%s4151_s9 + $0x16] sm:$0x1]  ;;  %v1456_v55 = vsel %vm262_vm2, %v1455_v42, %v1454_v45  ;;  %v1537_v56 = vrot.slane %v1443_v46, 6  ;;  %v1204_v59 = vrot.slane %v1195_v48, 5 }
  0x4a   : > { %3766 = vmatpush3.msk.msra.mxu0 %vm271_vm4, %v1037_v31  ;;  %3767 = vmatprep.mubr.msk.f32.mxu0 %vm4038_vm0, %v4037_v0  ;;  %v1614_v57 = vld [vmem:[%s4151_s9 + $0x17] sm:$0x1]  ;;  %v1867_v58 = vld [vmem:[%s4151_s9 + $0x18] sm:$0x1]  ;;  %v1536_v60 = vsel %vm259_vm1, %v1535_v47, %v1441_v50  ;;  %v1279_v61 = vld [vmem:[%s4151_s9 + $0x6] sm:$0x1]  ;;  %v1203_v62 = vsel %vm262_vm2, %v1202_v49, %v1201_v52  ;;  %v1458_v5 = vsel %vm265_vm3, %v1457_v51, %v1456_v55 }
  0x4b   : > { %3758 = vmatmul.mubr.msk.f32.vlgmr.msra.gmra.mrb[0].mxu1 %vm267_vm5, %v4176_v17  ;;  %3770 = vmatprep.subr.mxu0 %v4037_v0  ;;  %v1539_v63 = vrot.slane %v1444_v53, 5  ;;  %v1281_v1 = vld [vmem:[%s4151_s9 + $0x26] sm:$0x1]  ;;  %v1287_v2 = vrot.slane %v1280_v54, 7  ;;  %v1615_v4 = vld [vmem:[%s4151_s9 + $0x27] sm:$0x1]  ;;  %v1538_v10 = vsel %vm262_vm2, %v1537_v56, %v1536_v60  ;;  %v1205_v13 = vsel %vm265_vm3, %v1204_v59, %v1203_v62 }
  0x4c   : > { %3761 = vmatpush3.msk.msra.mxu1 %vm271_vm4, %v871_v38  ;;  %3762 = vmatprep.mubr.msk.f32.mxu1 %vm4038_vm0, %v4037_v0  ;;  %v1621_v6 = vrot.slane %v1614_v57, 7  ;;  %v1868_v7 = vld [vmem:[%s4151_s9 + $0x28] sm:$0x1]  ;;  %v1874_v8 = vrot.slane %v1867_v58, 7  ;;  %v1701_v9 = vld [vmem:[%s4151_s9 + $0x18] sm:$0x1] }
  0x4d   : > { %3768 = vmatmul.mubr.msk.f32.vlgmr.msra.gmra.mrb[2].mxu0 %vm267_vm5, %v4185_v22  ;;  %3785 = vmatprep.subr.mxu1 %v4037_v0  ;;  %v1613_v11 = vld [vmem:[%s4151_s9 + $0x7] sm:$0x1]  ;;  %v1866_v12 = vld [vmem:[%s4151_s9 + $0x8] sm:$0x1]  ;;  %v1282_v14 = vld [vmem:[%s4151_s9 + $0x36] sm:$0x1]  ;;  %v1288_v18 = vsel %vm259_vm1, %v1287_v2, %v1279_v61  ;;  %v1540_v24 = vsel %vm265_vm3, %v1539_v63, %v1538_v10 }
  0x4e   : > { %3771 = vmatpush3.msk.msra.mxu0 %vm271_vm4, %v1119_v44  ;;  %3772 = vmatprep.mubr.msk.f32.mxu0 %vm4038_vm0, %v4037_v0  ;;  %v1289_v15 = vrot.slane %v1281_v1, 6  ;;  %v1616_v16 = vld [vmem:[%s4151_s9 + $0x37] sm:$0x1]  ;;  %v1623_v19 = vrot.slane %v1615_v4, 6  ;;  %v1876_v20 = vrot.slane %v1868_v7, 6  ;;  %v1708_v23 = vrot.slane %v1701_v9, 7 }
  0x4f   : > { %3775 = vmatprep.subr.mxu0 %v4037_v0  ;;  %v1702_v21 = vld [vmem:[%s4151_s9 + $0x28] sm:$0x1]  ;;  %v1622_v25 = vsel %vm259_vm1, %v1621_v6, %v1613_v11  ;;  %v1869_v26 = vld [vmem:[%s4151_s9 + $0x38] sm:$0x1]  ;;  %v1875_v27 = vsel %vm259_vm1, %v1874_v8, %v1866_v12  ;;  %v1863_v31 = vld [vmem:[%s4151_s9 + $0x17] sm:$0x1] }
  0x50   : > { %v1700_v29 = vld [vmem:[%s4151_s9 + $0x8] sm:$0x1]  ;;  %v1703_v30 = vld [vmem:[%s4151_s9 + $0x38] sm:$0x1]  ;;  %v4345_v32 = vld [vmem:[%s4151_s9 + $0x27] sm:$0x1]  ;;  %v1290_v34 = vsel %vm262_vm2, %v1289_v15, %v1288_v18  ;;  %v1624_v38 = vsel %vm262_vm2, %v1623_v19, %v1622_v25  ;;  %v1877_v39 = vsel %vm262_vm2, %v1876_v20, %v1875_v27 }
  0x51   : > { %v4348_v33 = vld [vmem:[%s4151_s9 + $0x37] sm:$0x1]  ;;  %v1291_v35 = vrot.slane %v1282_v14, 5  ;;  %v1625_v36 = vrot.slane %v1616_v16, 5  ;;  %v1710_v37 = vrot.slane %v1702_v21, 6  ;;  %v1878_v40 = vrot.slane %v1869_v26, 5 }
  0x52   : > { %v1709_v41 = vsel %vm259_vm1, %v1708_v23, %v1700_v29  ;;  %v1862_v42 = vld [vmem:[%s4151_s9 + $0x7] sm:$0x1]  ;;  %v4362_v43 = vld [vmem:[%s4151_s9 + $0x1a] sm:$0x1]  ;;  %v1712_v44 = vrot.slane %v1703_v30, 5  ;;  %v1956_v45 = vrot.slane %v1863_v31, 7 }
  0x53   : > { %3763 = vmatmul.mubr.msk.f32.vlgmr.msra.gmra.mrb[0].mxu1 %vm267_vm5, %v4268_v28  ;;  %v1958_v46 = vrot.slane %v4345_v32, 6  ;;  %v1960_v47 = vrot.slane %v4348_v33, 5  ;;  %v4368_v48 = vld [vmem:[%s4151_s9 + $0x2a] sm:$0x1]  ;;  %v4371_v49 = vld [vmem:[%s4151_s9 + $0x3a] sm:$0x1]  ;;  %v1292_v52 = vsel %vm265_vm3, %v1291_v35, %v1290_v34  ;;  %v1711_v53 = vsel %vm262_vm2, %v1710_v37, %v1709_v41 }
  0x54   : > { %3786 = vmatpush3.msk.msra.mxu1 %vm271_vm4, %v1458_v5  ;;  %3787 = vmatprep.mubr.msk.f32.mxu1 %vm4038_vm0, %v4037_v0  ;;  %v2121_v50 = vld [vmem:[%s4151_s9 + $0xa] sm:$0x1]  ;;  %v2122_v51 = vld [vmem:[%s4151_s9 + $0x1a] sm:$0x1]  ;;  %v2295_v54 = vrot.slane %v4362_v43, 7  ;;  %v1626_v58 = vsel %vm265_vm3, %v1625_v36, %v1624_v38  ;;  %v4382_v59 = vsel %vm265_vm3, %v1878_v40, %v1877_v39  ;;  %v1957_v2 = vsel %vm259_vm1, %v1956_v45, %v1862_v42  ;;  %s3601_s21 = sshll.u32 %s4871_s19, 3 }
  0x55   : > { %3773 = vmatmul.mubr.msk.f32.vlgmr.msra.gmra.mrb[2].mxu0 %vm267_vm5, %v4236_v3  ;;  %3790 = vmatprep.subr.mxu1 %v4037_v0  ;;  %v2123_v55 = vld [vmem:[%s4151_s9 + $0x2a] sm:$0x1]  ;;  %v2124_v56 = vld [vmem:[%s4151_s9 + $0x3a] sm:$0x1]  ;;  %v2129_v57 = vrot.slane %v2122_v51, 7  ;;  %v2297_v5 = vrot.slane %v4368_v48, 6  ;;  %v4401_v10 = vsel %vm265_vm3, %v1712_v44, %v1711_v53  ;;  %v1959_v25 = vsel %vm262_vm2, %v1958_v46, %v1957_v2  ;;  %s234_s26 = scalar_lea.vmem %s4861_s3, %s3601_s21  ;;  %s238_s29 = scalar_lea.vmem %s4862_s4, %s3601_s21 }
  0x56   : > { %3776 = vmatpush3.msk.msra.mxu0 %vm271_vm4, %v1205_v13  ;;  %3777 = vmatprep.mubr.msk.f32.mxu0 %vm4038_vm0, %v4037_v0  ;;  %v4385_v60 = vld [vmem:[%s4151_s9 + $0x19] sm:$0x1]  ;;  %v2131_v61 = vrot.slane %v2123_v55, 6  ;;  %v2133_v62 = vrot.slane %v2124_v56, 5  ;;  %v2455_v63 = vld [vmem:[%s4151_s9 + $0xb] sm:$0x1] }
  0x57   : > { %3788 = vmatmul.mubr.msk.f32.vlgmr.msra.gmra.mrb[2].mxu1 %vm267_vm5, %v4185_v22  ;;  %3780 = vmatprep.subr.mxu0 %v4037_v0  ;;  %v2456_v1 = vld [vmem:[%s4151_s9 + $0x1b] sm:$0x1]  ;;  %v2287_v4 = vld [vmem:[%s4151_s9 + $0xa] sm:$0x1]  ;;  %v2130_v6 = vsel %vm259_vm1, %v2129_v57, %v2121_v50  ;;  %v2457_v7 = vld [vmem:[%s4151_s9 + $0x2b] sm:$0x1]  ;;  %v1961_v57 = vsel %vm265_vm3, %v1960_v47, %v1959_v25 }
  0x58   : > { %3791 = vmatpush3.msk.msra.mxu1 %vm271_vm4, %v1540_v24  ;;  %3792 = vmatprep.mubr.msk.f32.mxu1 %vm4038_vm0, %v4037_v0  ;;  %v2458_v8 = vld [vmem:[%s4151_s9 + $0x3b] sm:$0x1]  ;;  %v2463_v9 = vrot.slane %v2456_v1, 7  ;;  %v4404_v11 = vld [vmem:[%s4151_s9 + $0x29] sm:$0x1]  ;;  %v2132_v12 = vsel %vm262_vm2, %v2131_v61, %v2130_v6  ;;  %v2465_v13 = vrot.slane %v2457_v7, 6  ;;  %v2296_v40 = vsel %vm259_vm1, %v2295_v54, %v2287_v4 }
  0x59   : > { %3795 = vmatprep.subr.mxu1 %v4037_v0  ;;  %v2467_v14 = vrot.slane %v2458_v8, 5  ;;  %v2708_v15 = vld [vmem:[%s4151_s9 + $0xc] sm:$0x1]  ;;  %v2709_v16 = vld [vmem:[%s4151_s9 + $0x1c] sm:$0x1]  ;;  %v2299_v18 = vrot.slane %v4371_v49, 5  ;;  %v4414_v19 = vsel %vm265_vm3, %v2133_v62, %v2132_v12  ;;  %v2298_v8 = vsel %vm262_vm2, %v2297_v5, %v2296_v40 }
  0x5a   : > { %v2464_v20 = vsel %vm259_vm1, %v2463_v9, %v2455_v63  ;;  %v2710_v21 = vld [vmem:[%s4151_s9 + $0x2c] sm:$0x1]  ;;  %v2711_v23 = vld [vmem:[%s4151_s9 + $0x3c] sm:$0x1]  ;;  %v2716_v24 = vrot.slane %v2709_v16, 7  ;;  %v2042_v34 = vrot.slane %v4385_v60, 7 }
  0x5b   : > { %v4424_v26 = vld [vmem:[%s4151_s9 + $0x39] sm:$0x1]  ;;  %v2466_v27 = vsel %vm262_vm2, %v2465_v13, %v2464_v20  ;;  %v2718_v29 = vrot.slane %v2710_v21, 6  ;;  %v2720_v30 = vrot.slane %v2711_v23, 5  ;;  %v2542_v31 = vld [vmem:[%s4151_s9 + $0xc] sm:$0x1]  ;;  %v2300_v40 = vsel %vm265_vm3, %v2299_v18, %v2298_v8 }
  0x5c   : > { %v2543_v32 = vld [vmem:[%s4151_s9 + $0x1c] sm:$0x1]  ;;  %v4432_v35 = vsel %vm265_vm3, %v2467_v14, %v2466_v27  ;;  %v2717_v36 = vsel %vm259_vm1, %v2716_v24, %v2708_v15  ;;  %v2544_v37 = vld [vmem:[%s4151_s9 + $0x2c] sm:$0x1]  ;;  %v4439_v41 = vld [vmem:[%s4151_s9 + $0x19] sm:$0x1] }
  0x5d   : > { %3778 = vmatmul.mubr.msk.f32.vlgmr.msra.gmra.mrb[2].mxu0 %vm267_vm5, %v4176_v17  ;;  %v2545_v38 = vld [vmem:[%s4151_s9 + $0x3c] sm:$0x1]  ;;  %v2550_v39 = vrot.slane %v2543_v32, 7  ;;  %v2719_v42 = vsel %vm262_vm2, %v2718_v29, %v2717_v36  ;;  %v2552_v43 = vrot.slane %v2544_v37, 6  ;;  %v2704_v45 = vld [vmem:[%s4151_s9 + $0xb] sm:$0x1] }
  0x5e   : > { %3781 = vmatpush3.msk.msra.mxu0 %vm271_vm4, %v1292_v52  ;;  %3782 = vmatprep.mubr.msk.f32.mxu0 %vm4038_vm0, %v4037_v0  ;;  %v2554_v44 = vrot.slane %v2545_v38, 5  ;;  %v2705_v46 = vld [vmem:[%s4151_s9 + $0x1b] sm:$0x1]  ;;  %v2034_v50 = vld [vmem:[%s4151_s9 + $0x9] sm:$0x1]  ;;  %v2044_v51 = vrot.slane %v4404_v11, 6  ;;  %v4447_v52 = vsel %vm265_vm3, %v2720_v30, %v2719_v42 }
  0x5f   : > { %3793 = vmatmul.mubr.msk.f32.vlgmr.msra.gmra.mrb[2].mxu1 %vm267_vm5, %v4236_v3  ;;  %3805 = vmatprep.subr.mxu0 %v4037_v0  ;;  %v2551_v53 = vsel %vm259_vm1, %v2550_v39, %v2542_v31  ;;  %v2706_v54 = vld [vmem:[%s4151_s9 + $0x2b] sm:$0x1]  ;;  %v2707_v55 = vld [vmem:[%s4151_s9 + $0x3b] sm:$0x1]  ;;  %v2798_v56 = vrot.slane %v2705_v46, 7  ;;  %v2046_v2 = vrot.slane %v4424_v26, 5  ;;  %v2043_v24 = vsel %vm259_vm1, %v2042_v34, %v2034_v50 }
  0x60   : > { %3796 = vmatpush3.msk.msra.mxu1 %vm271_vm4, %v1626_v58  ;;  %3797 = vmatprep.mubr.msk.f32.mxu1 %vm4038_vm0, %v4037_v0  ;;  %v4456_v58 = vld [vmem:[%s4151_s9 + $0x29] sm:$0x1]  ;;  %v2553_v60 = vsel %vm262_vm2, %v2552_v43, %v2551_v53  ;;  %v2800_v61 = vrot.slane %v2706_v54, 6  ;;  %v2802_v62 = vrot.slane %v2707_v55, 5  ;;  %v3129_v63 = vld [vmem:[%s4151_s9 + $0xe] sm:$0x1]  ;;  %v2045_v55 = vsel %vm262_vm2, %v2044_v51, %v2043_v24 }
  0x61   : > { %3800 = vmatprep.subr.mxu1 %v4037_v0  ;;  %v3130_v1 = vld [vmem:[%s4151_s9 + $0x1e] sm:$0x1]  ;;  %v4465_v33 = vsel %vm265_vm3, %v2554_v44, %v2553_v60  ;;  %v2799_v47 = vsel %vm259_vm1, %v2798_v56, %v2704_v45  ;;  %v3131_v4 = vld [vmem:[%s4151_s9 + $0x2e] sm:$0x1]  ;;  %v2283_v9 = vld [vmem:[%s4151_s9 + $0x9] sm:$0x1] }
  0x62   : > { %v3132_v6 = vld [vmem:[%s4151_s9 + $0x3e] sm:$0x1]  ;;  %v3137_v7 = vrot.slane %v3130_v1, 7  ;;  %v2801_v12 = vsel %vm262_vm2, %v2800_v61, %v2799_v47  ;;  %v3139_v13 = vrot.slane %v3131_v4, 6  ;;  %v2876_v15 = vld [vmem:[%s4151_s9 + $0xd] sm:$0x1] }
  0x63   : > { %v3141_v14 = vrot.slane %v3132_v6, 5  ;;  %v2877_v16 = vld [vmem:[%s4151_s9 + $0x1d] sm:$0x1]  ;;  %v4486_v48 = vsel %vm265_vm3, %v2802_v62, %v2801_v12  ;;  %v2878_v20 = vld [vmem:[%s4151_s9 + $0x2d] sm:$0x1]  ;;  %vm3459_vm8 = vcmask 7168  }
  0x64   : > { %v3138_v5 = vsel %vm259_vm1, %v3137_v7, %v3129_v63  ;;  %v2879_v21 = vld [vmem:[%s4151_s9 + $0x3d] sm:$0x1]  ;;  %v2884_v23 = vrot.slane %v2877_v16, 7  ;;  %v2286_v25 = vld [vmem:[%s4151_s9 + $0x39] sm:$0x1]  ;;  %v2886_v29 = vrot.slane %v2878_v20, 6 }
  0x65   : > { %3783 = vmatmul.mubr.msk.f32.vlgmr.msra.gmra.mrb[2].mxu0 %vm267_vm5, %v4268_v28  ;;  %v3140_v27 = vsel %vm262_vm2, %v3139_v13, %v3138_v5  ;;  %v2888_v30 = vrot.slane %v2879_v21, 5  ;;  %v3125_v31 = vld [vmem:[%s4151_s9 + $0xd] sm:$0x1]  ;;  %v3126_v32 = vld [vmem:[%s4151_s9 + $0x1d] sm:$0x1]  ;;  %v2381_v62 = vrot.slane %v2286_v25, 5 }
  0x66   : > { %3806 = vmatpush3.msk.msra.mxu0 %vm271_vm4, %v4382_v59  ;;  %3807 = vmatprep.mubr.msk.f32.mxu0 %vm4038_vm0, %v4037_v0  ;;  %v2377_v59 = vrot.slane %v4439_v41, 7  ;;  %v4505_v36 = vsel %vm265_vm3, %v3141_v14, %v3140_v27  ;;  %v2885_v34 = vsel %vm259_vm1, %v2884_v23, %v2876_v15  ;;  %v3127_v37 = vld [vmem:[%s4151_s9 + $0x2d] sm:$0x1]  ;;  %v3128_v38 = vld [vmem:[%s4151_s9 + $0x3d] sm:$0x1]  ;;  %v3219_v39 = vrot.slane %v3126_v32, 7 }
  0x67   : > { %3798 = vmatmul.mubr.msk.f32.vlgmr.msra.gmra.mrb[2].mxu1 %vm267_vm5, %v4176_v17  ;;  %3810 = vmatprep.subr.mxu0 %v4037_v0  ;;  %v2887_v41 = vsel %vm262_vm2, %v2886_v29, %v2885_v34  ;;  %v3221_v42 = vrot.slane %v3127_v37, 6  ;;  %v3223_v43 = vrot.slane %v3128_v38, 5  ;;  %v2963_v44 = vld [vmem:[%s4151_s9 + $0xe] sm:$0x1]  ;;  %v2964_v45 = vld [vmem:[%s4151_s9 + $0x1e] sm:$0x1] }
  0x68   : > { %3801 = vmatpush3.msk.msra.mxu1 %vm271_vm4, %v4401_v10  ;;  %3802 = vmatprep.mubr.msk.f32.mxu1 %vm4038_vm0, %v4037_v0  ;;  %v2379_v10 = vrot.slane %v4456_v58, 6  ;;  %v2378_v46 = vsel %vm259_vm1, %v2377_v59, %v2283_v9  ;;  %v4522_v50 = vsel %vm265_vm3, %v2888_v30, %v2887_v41  ;;  %v3220_v49 = vsel %vm259_vm1, %v3219_v39, %v3125_v31  ;;  %v2965_v18 = vld [vmem:[%s4151_s9 + $0x2e] sm:$0x1]  ;;  %v2966_v53 = vld [vmem:[%s4151_s9 + $0x3e] sm:$0x1] }
  0x69   : > { %3808 = vmatmul.mubr.msk.f32.vlgmr.msra.gmra.mrb[4].mxu0 %vm267_vm5, %v4185_v22  ;;  %3825 = vmatprep.subr.mxu1 %v4037_v0  ;;  %v2971_v54 = vrot.slane %v2964_v45, 7  ;;  %v3222_v56 = vsel %vm262_vm2, %v3221_v42, %v3220_v49  ;;  %v2975_v58 = vrot.slane %v2966_v53, 5  ;;  %v3297_v60 = vld [vmem:[%s4151_s9 + $0xf] sm:$0x1]  ;;  %v3298_v61 = vld [vmem:[%s4151_s9 + $0x1f] sm:$0x1]  ;;  %v2047_v9 = vsel %vm265_vm3, %v2046_v2, %v2045_v55 }
  0x6a   : > { %3811 = vmatpush3.msk.msra.mxu0 %vm271_vm4, %v1961_v57  ;;  %3812 = vmatprep.mubr.msk.f32.mxu0 %vm4038_vm0, %v4037_v0  ;;  %v2973_v57 = vrot.slane %v2965_v18, 6  ;;  %v3224_v63 = vsel %vm265_vm3, %v3223_v43, %v3222_v56  ;;  %v3299_v47 = vld [vmem:[%s4151_s9 + $0x2f] sm:$0x1]  ;;  %v3300_v4 = vld [vmem:[%s4151_s9 + $0x3f] sm:$0x1]  ;;  %v3305_v6 = vrot.slane %v3298_v61, 7  ;;  %v2380_v7 = vsel %vm262_vm2, %v2379_v10, %v2378_v46 }
  0x6b   : > { %3815 = vmatprep.subr.mxu0 %v4037_v0  ;;  %v2972_v1 = vsel %vm259_vm1, %v2971_v54, %v2963_v44  ;;  %v3307_v8 = vrot.slane %v3299_v47, 6  ;;  %v3309_v51 = vrot.slane %v3300_v4, 5  ;;  %v2382_v26 = vsel %vm265_vm3, %v2381_v62, %v2380_v7 }
  0x6c   : > { %v2974_v11 = vsel %vm262_vm2, %v2973_v57, %v2972_v1  ;;  %v3306_v13 = vsel %vm259_vm1, %v3305_v6, %v3297_v60 }
  0x6d   : > { %v2976_v12 = vsel %vm265_vm3, %v2975_v58, %v2974_v11  ;;  %v3308_v14 = vsel %vm262_vm2, %v3307_v8, %v3306_v13 }
  0x6e   : > { %v3310_v2 = vsel %vm265_vm3, %v3309_v51, %v3308_v14 }
  0x6f   : > { %3803 = vmatmul.mubr.msk.f32.vlgmr.msra.gmra.mrb[2].mxu1 %vm267_vm5, %v4268_v28 }
  0x70   : > { %3826 = vmatpush3.msk.msra.mxu1 %vm271_vm4, %v2300_v40  ;;  %3827 = vmatprep.mubr.msk.f32.mxu1 %vm4038_vm0, %v4037_v0 }
  0x71   : > { %3813 = vmatmul.mubr.msk.f32.vlgmr.msra.gmra.mrb[4].mxu0 %vm267_vm5, %v4236_v3  ;;  %3830 = vmatprep.subr.mxu1 %v4037_v0 }
  0x72   : > { %3816 = vmatpush3.msk.msra.mxu0 %vm271_vm4, %v2047_v9  ;;  %3817 = vmatprep.mubr.msk.f32.mxu0 %vm4038_vm0, %v4037_v0 }
  0x73   : > { %3828 = vmatmul.mubr.msk.f32.vlgmr.msra.gmra.mrb[4].mxu1 %vm267_vm5, %v4185_v22  ;;  %3820 = vmatprep.subr.mxu0 %v4037_v0 }
  0x74   : > { %3831 = vmatpush3.msk.msra.mxu1 %vm271_vm4, %v2382_v26  ;;  %3832 = vmatprep.mubr.msk.f32.mxu1 %vm4038_vm0, %v4037_v0 }
  0x75   : > { %3835 = vmatprep.subr.mxu1 %v4037_v0 }
  0x79   : > { %3818 = vmatmul.mubr.msk.f32.vlgmr.msra.gmra.mrb[4].mxu0 %vm267_vm5, %v4176_v17 }
  0x7a   : > { %3821 = vmatpush3.msk.msra.mxu0 %vm271_vm4, %v4414_v19  ;;  %3822 = vmatprep.mubr.msk.f32.mxu0 %vm4038_vm0, %v4037_v0 }
  0x7b   : > { %3833 = vmatmul.mubr.msk.f32.vlgmr.msra.gmra.mrb[4].mxu1 %vm267_vm5, %v4236_v3  ;;  %3845 = vmatprep.subr.mxu0 %v4037_v0 }
  0x7c   : > { %3836 = vmatpush3.msk.msra.mxu1 %vm271_vm4, %v4432_v35  ;;  %3837 = vmatprep.mubr.msk.f32.mxu1 %vm4038_vm0, %v4037_v0  ;;  %v524_v35 = vlaneseq }
  0x7d   : > { %3840 = vmatprep.subr.mxu1 %v4037_v0 }
  0x81   : > { %3823 = vmatmul.mubr.msk.f32.vlgmr.msra.gmra.mrb[4].mxu0 %vm267_vm5, %v4268_v28 }
  0x82   : > { %3846 = vmatpush3.msk.msra.mxu0 %vm271_vm4, %v4447_v52  ;;  %3847 = vmatprep.mubr.msk.f32.mxu0 %vm4038_vm0, %v4037_v0 }
  0x83   : > { %3838 = vmatmul.mubr.msk.f32.vlgmr.msra.gmra.mrb[4].mxu1 %vm267_vm5, %v4176_v17  ;;  %3850 = vmatprep.subr.mxu0 %v4037_v0 }
  0x84   : > { %3841 = vmatpush3.msk.msra.mxu1 %vm271_vm4, %v4465_v33  ;;  %3842 = vmatprep.mubr.msk.f32.mxu1 %vm4038_vm0, %v4037_v0  ;;  %v525_v33 = vshrl.u32 %v524_v35, 7 }
  0x85   : > { %3848 = vmatmul.mubr.msk.f32.vlgmr.msra.gmra.mrb[6].mxu0 %vm267_vm5, %v4185_v22  ;;  %3865 = vmatprep.subr.mxu1 %v4037_v0 }
  0x86   : > { %3851 = vmatpush3.msk.msra.mxu0 %vm271_vm4, %v4486_v48  ;;  %3852 = vmatprep.mubr.msk.f32.mxu0 %vm4038_vm0, %v4037_v0 }
  0x87   : > { %3855 = vmatprep.subr.mxu0 %v4037_v0 }
  0x8b   : > { %3843 = vmatmul.mubr.msk.f32.vlgmr.msra.gmra.mrb[4].mxu1 %vm267_vm5, %v4268_v28 }
  0x8c   : > { %3866 = vmatpush3.msk.msra.mxu1 %vm271_vm4, %v4505_v36  ;;  %3867 = vmatprep.mubr.msk.f32.mxu1 %vm4038_vm0, %v4037_v0 }
  0x8d   : > { %3853 = vmatmul.mubr.msk.f32.vlgmr.msra.gmra.mrb[6].mxu0 %vm267_vm5, %v4236_v3  ;;  %3870 = vmatprep.subr.mxu1 %v4037_v0 }
  0x8e   : > { %3856 = vmatpush3.msk.msra.mxu0 %vm271_vm4, %v4522_v50  ;;  %3857 = vmatprep.mubr.msk.f32.mxu0 %vm4038_vm0, %v4037_v0 }
  0x8f   : > { %3868 = vmatmul.mubr.msk.f32.vlgmr.msra.gmra.mrb[6].mxu1 %vm267_vm5, %v4185_v22  ;;  %3860 = vmatprep.subr.mxu0 %v4037_v0  ;;  %v4039_v22 = vmov 1966171168  }
  0x90   : > { %3871 = vmatpush3.msk.msra.mxu1 %vm271_vm4, %v3224_v63  ;;  %3872 = vmatprep.mubr.msk.f32.mxu1 %vm4038_vm0, %v4037_v0  ;;  %v522_v19 = vunpack.c.l.s4 %v4039_v22 }
  0x91   : > { %3875 = vmatprep.subr.mxu1 %v4037_v0 }
  0x92   : > { %v523_v52 = vunpack.c.0.s8 %v522_v19 }
  0x95   : > { %3858 = vmatmul.mubr.msk.f32.vlgmr.msra.gmra.mrb[6].mxu0 %vm267_vm5, %v4176_v17 }
  0x96   : > { %3861 = vmatpush3.msk.msra.mxu0 %vm271_vm4, %v2976_v12  ;;  %3862 = vmatprep.mubr.msk.f32.mxu0 %vm4038_vm0, %v4037_v0 }
  0x97   : > { %3873 = vmatmul.mubr.msk.f32.vlgmr.msra.gmra.mrb[6].mxu1 %vm267_vm5, %v4236_v3  ;;  %v4638_v3 = vsub.s32 %v523_v52, %v525_v33 }
  0x98   : > { %3876 = vmatpush3.msk.msra.mxu1 %vm271_vm4, %v3310_v2  ;;  %3877 = vmatprep.mubr.msk.f32.mxu1 %vm4038_vm0, %v4037_v0 }
  0x9d   : > { %3863 = vmatmul.mubr.msk.f32.vlgmr.msra.gmra.mrb[6].mxu0 %vm267_vm5, %v4268_v28 }
  0x9f   : > { %3878 = vmatmul.mubr.msk.f32.vlgmr.msra.gmra.mrb[6].mxu1 %vm267_vm5, %v4176_v17 }
 0x11c   : > { %v514_v0 = vpop.f32.mrb[0].mxu0 }
 0x11d   : > { %v520_v15 = vcombine.high %v514_v0, %v514_v0  ;;  %v527_v28 = vrot.slane %v514_v0, %v4638_v3  ;;  %v3744_v16 = vpop.f32.mrb[1].mxu0  ;;  %v587_v17 = vsel %vm586_vm6, %v514_v0, 0.0  ;;  %v591_v59 = vmul.f32 %v514_v0, %v514_v0 }
 0x11e   : > { %588 = vadd.xlane.f32.xlu0 %v587_v17 }
 0x11f   : > { %v534_v48 = vrot.slane %v520_v15, %v4638_v3  ;;  %v535_v5 = vcombine.high %v527_v28, %v527_v28  ;;  %v543_v20 = vrot.slane %v527_v28, %v4638_v3  ;;  %v592_v21 = vsel %vm586_vm6, %v591_v59, 0.0 }
 0x121   : > { %v536_v23 = vcombine.high %v534_v48, %v534_v48  ;;  %v550_v24 = vrot.slane %v534_v48, %v4638_v3  ;;  %v557_v25 = vrot.slane %v535_v5, %v4638_v3  ;;  %v565_v27 = vcombine.high %v543_v20, %v543_v20  ;;  %578 = vst.msk [vmem:[%s4646_s15] sm:$0x1] %vm577_vm7, %v543_v20 }
 0x122   : > { %593 = vadd.xlane.f32.xlu0 %v592_v21 }
 0x123   : > { %v564_v29 = vrot.slane %v536_v23, %v4638_v3  ;;  %v566_v30 = vcombine.high %v550_v24, %v550_v24  ;;  %v567_v31 = vcombine.high %v557_v25, %v557_v25  ;;  %579 = vst.msk [vmem:[%s4646_s15 + $0x8] sm:$0x1] %vm577_vm7, %v557_v25  ;;  %580 = vst.msk [vmem:[%s4646_s15 + $0x10] sm:$0x1] %vm577_vm7, %v565_v27 }
 0x124   : > { %582 = vst.msk [vmem:[%s4646_s15 + $0x20] sm:$0x1] %vm577_vm7, %v550_v24 }
 0x125   : > { %v568_v32 = vcombine.high %v564_v29, %v564_v29  ;;  %581 = vst.msk [vmem:[%s4646_s15 + $0x18] sm:$0x1] %vm577_vm7, %v567_v31  ;;  %583 = vst.msk [vmem:[%s4646_s15 + $0x28] sm:$0x1] %vm577_vm7, %v564_v29 }
 0x126   : > { %584 = vst.msk [vmem:[%s4646_s15 + $0x30] sm:$0x1] %vm577_vm7, %v566_v30  ;;  %v940_v10 = vpop.f32.mrb[0].mxu1 }
 0x127   : > { %v946_v36 = vcombine.high %v940_v10, %v940_v10  ;;  %v953_v34 = vrot.slane %v940_v10, %v4638_v3  ;;  %v3764_v37 = vpop.f32.mrb[1].mxu1  ;;  %v1011_v38 = vsel %vm586_vm6, %v940_v10, 0.0  ;;  %v1015_v39 = vmul.f32 %v940_v10, %v940_v10  ;;  %585 = vst.msk [vmem:[%s4646_s15 + $0x38] sm:$0x1] %vm577_vm7, %v568_v32 }
 0x128   : > { %1012 = vadd.xlane.f32.xlu1 %v1011_v38 }
 0x129   : > { %v960_v40 = vrot.slane %v946_v36, %v4638_v3  ;;  %v961_v41 = vcombine.high %v953_v34, %v953_v34  ;;  %v969_v42 = vrot.slane %v953_v34, %v4638_v3  ;;  %v1016_v43 = vsel %vm586_vm6, %v1015_v39, 0.0 }
 0x12b   : > { %v962_v44 = vcombine.high %v960_v40, %v960_v40  ;;  %v976_v45 = vrot.slane %v960_v40, %v4638_v3  ;;  %v983_v46 = vrot.slane %v961_v41, %v4638_v3  ;;  %v991_v50 = vcombine.high %v969_v42, %v969_v42  ;;  %1003 = vst.msk [vmem:[%s4646_s15 + $0x1] sm:$0x1] %vm577_vm7, %v969_v42 }
 0x12c   : > { %1017 = vadd.xlane.f32.xlu1 %v1016_v43 }
 0x12d   : > { %v990_v49 = vrot.slane %v962_v44, %v4638_v3  ;;  %v992_v18 = vcombine.high %v976_v45, %v976_v45  ;;  %v993_v53 = vcombine.high %v983_v46, %v983_v46  ;;  %1004 = vst.msk [vmem:[%s4646_s15 + $0x9] sm:$0x1] %vm577_vm7, %v983_v46  ;;  %1005 = vst.msk [vmem:[%s4646_s15 + $0x11] sm:$0x1] %vm577_vm7, %v991_v50 }
 0x12e   : > { %1007 = vst.msk [vmem:[%s4646_s15 + $0x21] sm:$0x1] %vm577_vm7, %v976_v45 }
 0x12f   : > { %v994_v54 = vcombine.high %v990_v49, %v990_v49  ;;  %1006 = vst.msk [vmem:[%s4646_s15 + $0x19] sm:$0x1] %vm577_vm7, %v993_v53  ;;  %1008 = vst.msk [vmem:[%s4646_s15 + $0x29] sm:$0x1] %vm577_vm7, %v990_v49 }
 0x130   : > { %1009 = vst.msk [vmem:[%s4646_s15 + $0x31] sm:$0x1] %vm577_vm7, %v992_v18 }
 0x131   : > { %1010 = vst.msk [vmem:[%s4646_s15 + $0x39] sm:$0x1] %vm577_vm7, %v994_v54 }
 0x138   : > { %v1361_v55 = vpop.f32.mrb[2].mxu0 }
 0x139   : > { %v1367_v56 = vcombine.high %v1361_v55, %v1361_v55  ;;  %v1374_v57 = vrot.slane %v1361_v55, %v4638_v3  ;;  %v3784_v58 = vpop.f32.mrb[3].mxu0  ;;  %v1432_v60 = vsel %vm586_vm6, %v1361_v55, 0.0  ;;  %v1436_v61 = vmul.f32 %v1361_v55, %v1361_v55 }
 0x13a   : > { %1433 = vadd.xlane.f32.xlu0 %v1432_v60 }
 0x13b   : > { %v1381_v62 = vrot.slane %v1367_v56, %v4638_v3  ;;  %v1382_v63 = vcombine.high %v1374_v57, %v1374_v57  ;;  %v1390_v1 = vrot.slane %v1374_v57, %v4638_v3  ;;  %v1437_v47 = vsel %vm586_vm6, %v1436_v61, 0.0 }
 0x13c   : > { %1438 = vadd.xlane.f32.xlu1 %v1437_v47 }
 0x13d   : > { %v1383_v4 = vcombine.high %v1381_v62, %v1381_v62  ;;  %v1397_v6 = vrot.slane %v1381_v62, %v4638_v3  ;;  %v1404_v7 = vrot.slane %v1382_v63, %v4638_v3  ;;  %v1412_v11 = vcombine.high %v1390_v1, %v1390_v1  ;;  %1424 = vst.msk [vmem:[%s4646_s15 + $0x2] sm:$0x1] %vm577_vm7, %v1390_v1 }
 0x13f   : > { %v1411_v8 = vrot.slane %v1383_v4, %v4638_v3  ;;  %v1413_v51 = vcombine.high %v1397_v6, %v1397_v6  ;;  %v1414_v9 = vcombine.high %v1404_v7, %v1404_v7  ;;  %1425 = vst.msk [vmem:[%s4646_s15 + $0xa] sm:$0x1] %vm577_vm7, %v1404_v7  ;;  %1426 = vst.msk [vmem:[%s4646_s15 + $0x12] sm:$0x1] %vm577_vm7, %v1412_v11 }
 0x140   : > { %1428 = vst.msk [vmem:[%s4646_s15 + $0x22] sm:$0x1] %vm577_vm7, %v1397_v6 }
 0x141   : > { %v1415_v12 = vcombine.high %v1411_v8, %v1411_v8  ;;  %1427 = vst.msk [vmem:[%s4646_s15 + $0x1a] sm:$0x1] %vm577_vm7, %v1414_v9  ;;  %1429 = vst.msk [vmem:[%s4646_s15 + $0x2a] sm:$0x1] %vm577_vm7, %v1411_v8 }
 0x142   : > { %1430 = vst.msk [vmem:[%s4646_s15 + $0x32] sm:$0x1] %vm577_vm7, %v1413_v51  ;;  %v1782_v13 = vpop.f32.mrb[2].mxu1 }
 0x143   : > { %v1788_v14 = vcombine.high %v1782_v13, %v1782_v13  ;;  %v1795_v26 = vrot.slane %v1782_v13, %v4638_v3  ;;  %v3804_v2 = vpop.f32.mrb[3].mxu1  ;;  %v1853_v22 = vsel %vm586_vm6, %v1782_v13, 0.0  ;;  %v1857_v19 = vmul.f32 %v1782_v13, %v1782_v13  ;;  %1431 = vst.msk [vmem:[%s4646_s15 + $0x3a] sm:$0x1] %vm577_vm7, %v1415_v12 }
 0x144   : > { %1854 = vadd.xlane.f32.xlu0 %v1853_v22 }
 0x145   : > { %v1802_v35 = vrot.slane %v1788_v14, %v4638_v3  ;;  %v1803_v52 = vcombine.high %v1795_v26, %v1795_v26  ;;  %v1811_v33 = vrot.slane %v1795_v26, %v4638_v3  ;;  %v1858_v0 = vsel %vm586_vm6, %v1857_v19, 0.0 }
 0x146   : > { %1859 = vadd.xlane.f32.xlu1 %v1858_v0 }
 0x147   : > { %v1804_v15 = vcombine.high %v1802_v35, %v1802_v35  ;;  %v1818_v28 = vrot.slane %v1802_v35, %v4638_v3  ;;  %v1825_v16 = vrot.slane %v1803_v52, %v4638_v3  ;;  %v1833_v17 = vcombine.high %v1811_v33, %v1811_v33  ;;  %1845 = vst.msk [vmem:[%s4646_s15 + $0x3] sm:$0x1] %vm577_vm7, %v1811_v33 }
 0x149   : > { %v1832_v59 = vrot.slane %v1804_v15, %v4638_v3  ;;  %v1834_v48 = vcombine.high %v1818_v28, %v1818_v28  ;;  %v1835_v5 = vcombine.high %v1825_v16, %v1825_v16  ;;  %1846 = vst.msk [vmem:[%s4646_s15 + $0xb] sm:$0x1] %vm577_vm7, %v1825_v16  ;;  %1847 = vst.msk [vmem:[%s4646_s15 + $0x13] sm:$0x1] %vm577_vm7, %v1833_v17 }
 0x14a   : > { %1849 = vst.msk [vmem:[%s4646_s15 + $0x23] sm:$0x1] %vm577_vm7, %v1818_v28 }
 0x14b   : > { %v1836_v20 = vcombine.high %v1832_v59, %v1832_v59  ;;  %1848 = vst.msk [vmem:[%s4646_s15 + $0x1b] sm:$0x1] %vm577_vm7, %v1835_v5  ;;  %1850 = vst.msk [vmem:[%s4646_s15 + $0x2b] sm:$0x1] %vm577_vm7, %v1832_v59 }
 0x14c   : > { %1851 = vst.msk [vmem:[%s4646_s15 + $0x33] sm:$0x1] %vm577_vm7, %v1834_v48 }
 0x14d   : > { %1852 = vst.msk [vmem:[%s4646_s15 + $0x3b] sm:$0x1] %vm577_vm7, %v1836_v20 }
 0x154   : > { %v2203_v21 = vpop.f32.mrb[4].mxu0 }
 0x155   : > { %v2209_v23 = vcombine.high %v2203_v21, %v2203_v21  ;;  %v2216_v24 = vrot.slane %v2203_v21, %v4638_v3  ;;  %v3824_v25 = vpop.f32.mrb[5].mxu0  ;;  %v2274_v27 = vsel %vm586_vm6, %v2203_v21, 0.0  ;;  %v2278_v29 = vmul.f32 %v2203_v21, %v2203_v21 }
 0x156   : > { %2275 = vadd.xlane.f32.xlu0 %v2274_v27 }
 0x157   : > { %v2223_v30 = vrot.slane %v2209_v23, %v4638_v3  ;;  %v2224_v31 = vcombine.high %v2216_v24, %v2216_v24  ;;  %v2232_v32 = vrot.slane %v2216_v24, %v4638_v3  ;;  %v2279_v10 = vsel %vm586_vm6, %v2278_v29, 0.0 }
 0x158   : > { %2280 = vadd.xlane.f32.xlu1 %v2279_v10 }
 0x159   : > { %v2225_v36 = vcombine.high %v2223_v30, %v2223_v30  ;;  %v2239_v34 = vrot.slane %v2223_v30, %v4638_v3  ;;  %v2246_v37 = vrot.slane %v2224_v31, %v4638_v3  ;;  %v2254_v38 = vcombine.high %v2232_v32, %v2232_v32  ;;  %2266 = vst.msk [vmem:[%s4646_s15 + $0x4] sm:$0x1] %vm577_vm7, %v2232_v32 }
 0x15b   : > { %v2253_v39 = vrot.slane %v2225_v36, %v4638_v3  ;;  %v2255_v40 = vcombine.high %v2239_v34, %v2239_v34  ;;  %v2256_v41 = vcombine.high %v2246_v37, %v2246_v37  ;;  %2267 = vst.msk [vmem:[%s4646_s15 + $0xc] sm:$0x1] %vm577_vm7, %v2246_v37  ;;  %2268 = vst.msk [vmem:[%s4646_s15 + $0x14] sm:$0x1] %vm577_vm7, %v2254_v38 }
 0x15c   : > { %2270 = vst.msk [vmem:[%s4646_s15 + $0x24] sm:$0x1] %vm577_vm7, %v2239_v34 }
 0x15d   : > { %v2257_v42 = vcombine.high %v2253_v39, %v2253_v39  ;;  %2269 = vst.msk [vmem:[%s4646_s15 + $0x1c] sm:$0x1] %vm577_vm7, %v2256_v41  ;;  %2271 = vst.msk [vmem:[%s4646_s15 + $0x2c] sm:$0x1] %vm577_vm7, %v2253_v39 }
 0x15e   : > { %2272 = vst.msk [vmem:[%s4646_s15 + $0x34] sm:$0x1] %vm577_vm7, %v2255_v40  ;;  %v2624_v43 = vpop.f32.mrb[4].mxu1 }
 0x15f   : > { %v2630_v44 = vcombine.high %v2624_v43, %v2624_v43  ;;  %v2637_v45 = vrot.slane %v2624_v43, %v4638_v3  ;;  %v3844_v46 = vpop.f32.mrb[5].mxu1  ;;  %v2695_v50 = vsel %vm586_vm6, %v2624_v43, 0.0  ;;  %v2699_v49 = vmul.f32 %v2624_v43, %v2624_v43  ;;  %2273 = vst.msk [vmem:[%s4646_s15 + $0x3c] sm:$0x1] %vm577_vm7, %v2257_v42 }
 0x160   : > { %2696 = vadd.xlane.f32.xlu0 %v2695_v50 }
 0x161   : > { %v2644_v18 = vrot.slane %v2630_v44, %v4638_v3  ;;  %v2645_v53 = vcombine.high %v2637_v45, %v2637_v45  ;;  %v2653_v54 = vrot.slane %v2637_v45, %v4638_v3  ;;  %v2700_v55 = vsel %vm586_vm6, %v2699_v49, 0.0 }
 0x162   : > { %2701 = vadd.xlane.f32.xlu1 %v2700_v55 }
 0x163   : > { %v2646_v56 = vcombine.high %v2644_v18, %v2644_v18  ;;  %v2660_v57 = vrot.slane %v2644_v18, %v4638_v3  ;;  %v2667_v58 = vrot.slane %v2645_v53, %v4638_v3  ;;  %v2675_v60 = vcombine.high %v2653_v54, %v2653_v54  ;;  %2687 = vst.msk [vmem:[%s4646_s15 + $0x5] sm:$0x1] %vm577_vm7, %v2653_v54 }
 0x165   : > { %v2674_v61 = vrot.slane %v2646_v56, %v4638_v3  ;;  %v2676_v62 = vcombine.high %v2660_v57, %v2660_v57  ;;  %v2677_v63 = vcombine.high %v2667_v58, %v2667_v58  ;;  %2688 = vst.msk [vmem:[%s4646_s15 + $0xd] sm:$0x1] %vm577_vm7, %v2667_v58  ;;  %2689 = vst.msk [vmem:[%s4646_s15 + $0x15] sm:$0x1] %vm577_vm7, %v2675_v60 }
 0x166   : > { %2691 = vst.msk [vmem:[%s4646_s15 + $0x25] sm:$0x1] %vm577_vm7, %v2660_v57 }
 0x167   : > { %v2678_v1 = vcombine.high %v2674_v61, %v2674_v61  ;;  %2690 = vst.msk [vmem:[%s4646_s15 + $0x1d] sm:$0x1] %vm577_vm7, %v2677_v63  ;;  %2692 = vst.msk [vmem:[%s4646_s15 + $0x2d] sm:$0x1] %vm577_vm7, %v2674_v61 }
 0x168   : > { %2693 = vst.msk [vmem:[%s4646_s15 + $0x35] sm:$0x1] %vm577_vm7, %v2676_v62 }
 0x169   : > { %2694 = vst.msk [vmem:[%s4646_s15 + $0x3d] sm:$0x1] %vm577_vm7, %v2678_v1 }
 0x170   : > { %v3045_v47 = vpop.f32.mrb[6].mxu0 }
 0x171   : > { %v3051_v4 = vcombine.high %v3045_v47, %v3045_v47  ;;  %v3058_v6 = vrot.slane %v3045_v47, %v4638_v3  ;;  %v3864_v7 = vpop.f32.mrb[7].mxu0  ;;  %v3116_v11 = vsel %vm586_vm6, %v3045_v47, 0.0  ;;  %v3120_v8 = vmul.f32 %v3045_v47, %v3045_v47 }
 0x172   : > { %v3379_v51 = vpop.f32.mrb[6].mxu1  ;;  %3117 = vadd.xlane.f32.xlu0 %v3116_v11 }
 0x173   : > { %v3065_v9 = vrot.slane %v3051_v4, %v4638_v3  ;;  %v3066_v12 = vcombine.high %v3058_v6, %v3058_v6  ;;  %v3074_v13 = vrot.slane %v3058_v6, %v4638_v3  ;;  %v3385_v14 = vcombine.high %v3379_v51, %v3379_v51  ;;  %v3879_v26 = vpop.f32.mrb[7].mxu1 }
 0x174   : > { %v3392_v2 = vrot.slane %v3379_v51, %v4638_v3  ;;  %v3121_v22 = vsel %vm586_vm6, %v3120_v8, 0.0  ;;  %v3450_v19 = vsel %vm586_vm6, %v3379_v51, 0.0  ;;  %v3454_v35 = vmul.f32 %v3379_v51, %v3379_v51 }
 0x175   : > { %v3067_v52 = vcombine.high %v3065_v9, %v3065_v9  ;;  %v3081_v33 = vrot.slane %v3065_v9, %v4638_v3  ;;  %v3088_v0 = vrot.slane %v3066_v12, %v4638_v3  ;;  %v3096_v15 = vcombine.high %v3074_v13, %v3074_v13  ;;  %3122 = vadd.xlane.f32.xlu1 %v3121_v22 }
 0x176   : > { %3108 = vst.msk [vmem:[%s4646_s15 + $0x6] sm:$0x1] %vm577_vm7, %v3074_v13  ;;  %v3399_v28 = vrot.slane %v3385_v14, %v4638_v3  ;;  %v3400_v16 = vcombine.high %v3392_v2, %v3392_v2  ;;  %v3408_v17 = vrot.slane %v3392_v2, %v4638_v3  ;;  %3451 = vadd.xlane.f32.xlu0 %v3450_v19  ;;  %v3455_v20 = vsel %vm586_vm6, %v3454_v35, 0.0 }
 0x177   : > { %v3095_v59 = vrot.slane %v3067_v52, %v4638_v3  ;;  %v3097_v48 = vcombine.high %v3081_v33, %v3081_v33  ;;  %v3098_v5 = vcombine.high %v3088_v0, %v3088_v0  ;;  %3109 = vst.msk [vmem:[%s4646_s15 + $0xe] sm:$0x1] %vm577_vm7, %v3088_v0  ;;  %3110 = vst.msk [vmem:[%s4646_s15 + $0x16] sm:$0x1] %vm577_vm7, %v3096_v15 }
 0x178   : > { %3112 = vst.msk [vmem:[%s4646_s15 + $0x26] sm:$0x1] %vm577_vm7, %v3081_v33  ;;  %v3401_v21 = vcombine.high %v3399_v28, %v3399_v28  ;;  %v3415_v23 = vrot.slane %v3399_v28, %v4638_v3  ;;  %v3422_v24 = vrot.slane %v3400_v16, %v4638_v3  ;;  %v3430_v25 = vcombine.high %v3408_v17, %v3408_v17 }
 0x179   : > { %3442 = vst.msk [vmem:[%s4646_s15 + $0x7] sm:$0x1] %vm577_vm7, %v3408_v17  ;;  %v3099_v27 = vcombine.high %v3095_v59, %v3095_v59  ;;  %3456 = vadd.xlane.f32.xlu1 %v3455_v20  ;;  %3111 = vst.msk [vmem:[%s4646_s15 + $0x1e] sm:$0x1] %vm577_vm7, %v3098_v5 }
 0x17a   : > { %3113 = vst.msk [vmem:[%s4646_s15 + $0x2e] sm:$0x1] %vm577_vm7, %v3095_v59  ;;  %3114 = vst.msk [vmem:[%s4646_s15 + $0x36] sm:$0x1] %vm577_vm7, %v3097_v48  ;;  %v3429_v29 = vrot.slane %v3401_v21, %v4638_v3  ;;  %v3431_v30 = vcombine.high %v3415_v23, %v3415_v23  ;;  %v3432_v31 = vcombine.high %v3422_v24, %v3422_v24 }
 0x17b   : > { %3443 = vst.msk [vmem:[%s4646_s15 + $0xf] sm:$0x1] %vm577_vm7, %v3422_v24  ;;  %3444 = vst.msk [vmem:[%s4646_s15 + $0x17] sm:$0x1] %vm577_vm7, %v3430_v25 }
 0x17c   : > { %3446 = vst.msk [vmem:[%s4646_s15 + $0x27] sm:$0x1] %vm577_vm7, %v3415_v23  ;;  %3115 = vst.msk [vmem:[%s4646_s15 + $0x3e] sm:$0x1] %vm577_vm7, %v3099_v27  ;;  %v3433_v32 = vcombine.high %v3429_v29, %v3429_v29 }
 0x17d   : > { %3445 = vst.msk [vmem:[%s4646_s15 + $0x1f] sm:$0x1] %vm577_vm7, %v3432_v31  ;;  %3447 = vst.msk [vmem:[%s4646_s15 + $0x2f] sm:$0x1] %vm577_vm7, %v3429_v29 }
 0x17e   : > { %3448 = vst.msk [vmem:[%s4646_s15 + $0x37] sm:$0x1] %vm577_vm7, %v3431_v30  ;;  %3449 = vst.msk [vmem:[%s4646_s15 + $0x3f] sm:$0x1] %vm577_vm7, %v3433_v32 }
 0x1ab   : > { %v589_v3 = vpop.xlane.xlu0 %588 }
 0x1af   : > { %v594_v36 = vpop.xlane.xlu0 %593 }
 0x1b5   : > { %v1013_v10 = vpop.xlane.xlu1 %1012 }
 0x1b6   : > { %v1014_v42 = vadd.f32 %v1013_v10, %v589_v3 }
 0x1b9   : > { %v1018_v34 = vpop.xlane.xlu1 %1017 }
 0x1ba   : > { %v1019_v45 = vadd.f32 %v1018_v34, %v594_v36 }
 0x1c7   : > { %v1434_v37 = vpop.xlane.xlu0 %1433 }
 0x1c8   : > { %v1435_v43 = vadd.f32 %v1434_v37, %v1014_v42 }
 0x1c9   : > { %v1439_v38 = vpop.xlane.xlu1 %1438 }
 0x1ca   : > { %v1440_v49 = vadd.f32 %v1439_v38, %v1019_v45 }
 0x1d1   : > { %v1855_v39 = vpop.xlane.xlu0 %1854 }
 0x1d2   : > { %v1856_v50 = vadd.f32 %v1855_v39, %v1435_v43 }
 0x1d3   : > { %v1860_v40 = vpop.xlane.xlu1 %1859 }
 0x1d4   : > { %v1861_v54 = vadd.f32 %v1860_v40, %v1440_v49 }
 0x1e3   : > { %v2276_v41 = vpop.xlane.xlu0 %2275 }
 0x1e4   : > { %v2277_v18 = vadd.f32 %v2276_v41, %v1856_v50 }
 0x1e5   : > { %v2281_v44 = vpop.xlane.xlu1 %2280 }
 0x1e6   : > { %v2282_v57 = vadd.f32 %v2281_v44, %v1861_v54 }
 0x1ed   : > { %v2697_v46 = vpop.xlane.xlu0 %2696 }
 0x1ee   : > { %v2698_v56 = vadd.f32 %v2697_v46, %v2277_v18 }
 0x1ef   : > { %v2702_v53 = vpop.xlane.xlu1 %2701 }
 0x1f0   : > { %v2703_v61 = vadd.f32 %v2702_v53, %v2282_v57 }
 0x1ff   : > { %v3118_v55 = vpop.xlane.xlu0 %3117 }
 0x200   : > { %v3119_v58 = vadd.f32 %v3118_v55, %v2698_v56 }
 0x202   : > { %v3123_v60 = vpop.xlane.xlu1 %3122 }
 0x203   : > { %v3452_v62 = vpop.xlane.xlu0 %3451  ;;  %v3124_v1 = vadd.f32 %v3123_v60, %v2703_v61 }
 0x204   : > { %v3453_v63 = vadd.f32 %v3452_v62, %v3119_v58 }
 0x206   : > { %3460 = vst.msk [vmem:[%s234_s26] sm:$0xff] %vm3459_vm8, %v3453_v63  ;;  %v3457_v47 = vpop.xlane.xlu1 %3456 }
 0x207   : > { %v3458_v4 = vadd.f32 %v3457_v47, %v3124_v1 }
 0x209   : > { %3461 = vst.msk [vmem:[%s238_s29] sm:$0xff] %vm3459_vm8, %v3458_v4 }
 0x20a PF: > { %p15_p8 = scmp.ge.s32.totalorder %s4087_s20, 4   ;;  %s4866_s15 = smov %s4024_s16 }
 0x20b   : > { %s4867_s16 = smov %s4028_s17  ;;  %s4868_s17 = smov %s4097_s23 }
 0x20c   : > { %s4869_s18 = smov %s4087_s20  ;;  %17 = sbr.rel (!%p15_p8) target bundleno = 3 (0x3), region = 95 }
 0x213   :  { %3511 = vsyncpa [#allocation3], 1 }
 0x214   :  { %3513 = vsyncpa [#allocation3 + $0x1], 1 }

</bundles_post_ra>
